<compile_context>
chip_gen: v6e
topology: v6e:2x2x1
jax: 0.10.0
libtpu: 0.0.40
codegen_flags: <defaults>
</compile_context>

<pallas_src>
import jax
import jax.numpy as jnp
from jax import lax
from jax.experimental import pallas as pl
from jax.experimental.pallas import tpu as pltpu

JACCARD_THRESHOLD = 0.01  # same default as get_jaccard / drop_dissimilar_edges


def _dominant_kernel(a_ref, x_ref,
                     w1_ref, b1_ref,     # Encoder.gc1            (F_pad  -> H_pad)
                     w2_ref, b2_ref,     # Encoder.gc2            (H_pad  -> H_pad)
                     w35_ref, b35_ref,   # AttrDec.gc1 | StructDec.gc1 fused (H_pad -> 2*H_pad)
                     w4_ref, b4_ref,     # AttrDec.gc2            (H_pad  -> F_pad)
                     a_hat_ref, x_hat_ref):
    A = a_ref[...]                                   # [N, N] raw adjacency (0/1), f32
    Xp = x_ref[...]                                  # [N, F_pad] node attributes, f32

    # ---- _preprocess_adjacency_matrix: Jaccard similarity edge filtering ----
    # (divide-free: keep edge iff inter > T * denom, equivalent to J > T for denom>0;
    #  denom == 0 implies inter == 0 so the edge is dropped, matching the reference)
    M = (Xp != 0.0).astype(jnp.float32)              # nonzero-pattern mask [N, F_pad]
    nnz = jnp.sum(M, axis=1, keepdims=True)          # per-node nonzero count [N, 1]
    inter = lax.dot_general(M, M, (((1,), (1,)), ((), ())),
                            preferred_element_type=jnp.float32)   # M @ M.T, exact f32
    denom = nnz + nnz.T - inter
    keep = (inter > JACCARD_THRESHOLD * denom).astype(jnp.float32)
    A_filt = A * keep

    # ---- GCNConv normalization with the self loop folded in ----
    # A_t = A_filt + I ; deg = rowsum(A_t) = rowsum(A_filt) + 1 >= 1 (rsqrt safe)
    # A_norm = D^-1/2 A_t D^-1/2 = dinv*A_filt*dinv^T + diag(dinv^2)
    deg = jnp.sum(A_filt, axis=1, keepdims=True) + 1.0   # [N, 1]
    dinv = lax.rsqrt(deg)
    dii = dinv * dinv                                    # self-loop coefficient [N, 1]
    A_norm = (dinv * A_filt * dinv.T).astype(jnp.bfloat16)   # off-diagonal part, bf16 for MXU

    def gcn_relu(h_bf, w_bf, b):
        # relu( A_norm @ (h @ W) + dii * (h @ W) + b )   -- self loop as [N,1] FMA
        hw = jnp.dot(h_bf, w_bf, preferred_element_type=jnp.float32)          # f32 acc
        agg = jnp.dot(A_norm, hw.astype(jnp.bfloat16),
                      preferred_element_type=jnp.float32)
        return jnp.maximum(agg + dii * hw + b, 0.0)

    # TODO(synk): dropout is evaluated as identity (eval mode); training-mode
    # dropout would require pltpu.prng_seed / prng_random_bits masking.

    # ---- shared encoder ----
    h = gcn_relu(Xp.astype(jnp.bfloat16), w1_ref[...], b1_ref[...])
    h = gcn_relu(h.astype(jnp.bfloat16), w2_ref[...], b2_ref[...])
    h_bf = h.astype(jnp.bfloat16)

    # ---- fused first layers of attribute + structure decoders ----
    fused = gcn_relu(h_bf, w35_ref[...], b35_ref[...])        # [N, 2*H_pad]
    Hp = w4_ref.shape[0]
    a = fused[:, :Hp]                                         # attribute-decoder branch
    s = fused[:, Hp:]                                         # structure-decoder branch

    # ---- attribute decoder, second layer ----
    x_hat = gcn_relu(a.astype(jnp.bfloat16), w4_ref[...], b4_ref[...])   # [N, F_pad]

    # ---- structure decoder: A_hat = S S^T (MXU trans_b, no explicit transpose) ----
    s_bf = s.astype(jnp.bfloat16)
    a_hat = lax.dot_general(s_bf, s_bf, (((1,), (1,)), ((), ())),
                            preferred_element_type=jnp.float32)

    a_hat_ref[...] = a_hat
    x_hat_ref[...] = x_hat


def _round_up(x, m):
    return ((x + m - 1) // m) * m


def _pad2d(x, rows, cols):
    r, c = x.shape
    return jnp.pad(x, ((0, rows - r), (0, cols - c)))


@jax.jit
def dominant_forward(A, X, params):
    N, F = X.shape
    H = params["w1"].shape[1]
    F_pad = _round_up(F, 128)      # lane-dense feature width
    H_pad = _round_up(H, 128)      # lane-dense hidden width

    # Zero-pad features / weights / biases so every intermediate is 128-lane dense.
    # Padded weight columns + zero biases keep the padded channels identically zero
    # through every relu, so real outputs are unchanged.
    Xp = _pad2d(X, N, F_pad)
    w1 = _pad2d(params["w1"], F_pad, H_pad).astype(jnp.bfloat16)
    w2 = _pad2d(params["w2"], H_pad, H_pad).astype(jnp.bfloat16)
    w35 = jnp.concatenate([_pad2d(params["w3"], H_pad, H_pad),
                           _pad2d(params["w5"], H_pad, H_pad)], axis=1).astype(jnp.bfloat16)
    w4 = _pad2d(params["w4"], H_pad, F_pad).astype(jnp.bfloat16)
    b1 = _pad2d(params["b1"], 1, H_pad)
    b2 = _pad2d(params["b2"], 1, H_pad)
    b35 = jnp.concatenate([_pad2d(params["b3"], 1, H_pad),
                           _pad2d(params["b5"], 1, H_pad)], axis=1)
    b4 = _pad2d(params["b4"], 1, F_pad)

    vmem = pl.BlockSpec(memory_space=pltpu.MemorySpace.VMEM)
    a_hat, x_hat_pad = pl.pallas_call(
        _dominant_kernel,
        out_shape=(jax.ShapeDtypeStruct((N, N), jnp.float32),      # struct_reconstructed
                   jax.ShapeDtypeStruct((N, F_pad), jnp.float32)), # x_hat (padded)
        in_specs=[vmem] * 10,
        out_specs=(vmem, vmem),
    )(A, Xp, w1, b1, w2, b2, w35, b35, w4, b4)
    return a_hat, x_hat_pad[:, :F]


def edge_index_to_dense(edge_index, n):
    """Glue: densify a [2, E] edge_index (weight 1.0 per edge) into [N, N]."""
    A = jnp.zeros((n, n), dtype=jnp.float32)
    return A.at[edge_index[0], edge_index[1]].set(1.0)


def init_params(key, feat_size, hidden_size):
    """Deterministic Glorot-uniform init for the 5 GCNConv layers."""
    def glorot(k, fan_in, fan_out):
        limit = (6.0 / (fan_in + fan_out)) ** 0.5
        return jax.random.uniform(k, (fan_in, fan_out), jnp.float32, -limit, limit)

    ks = jax.random.split(key, 5)
    dims = [(feat_size, hidden_size),   # Encoder.gc1
            (hidden_size, hidden_size), # Encoder.gc2
            (hidden_size, hidden_size), # AttrDec.gc1
            (hidden_size, feat_size),   # AttrDec.gc2
            (hidden_size, hidden_size)] # StructDec.gc1
    params = {}
    for i, ((fi, fo), k) in enumerate(zip(dims, ks), start=1):
        params[f"w{i}"] = glorot(k, fi, fo)
        params[f"b{i}"] = jnp.zeros((1, fo), jnp.float32)
    return params


if __name__ == "__main__":
    key = jax.random.PRNGKey(0)
    k_adj, k_feat, k_mask, k_par = jax.random.split(key, 4)

    N, F, H = 128, 16, 32   # nodes (128 -> lane-dense [N,N] output), feat_size, hidden_size

    # synthetic symmetric adjacency without self loops (weight 1.0 edges)
    probs = jax.random.uniform(k_adj, (N, N))
    upper = (probs > 0.9).astype(jnp.float32)
    A = jnp.triu(upper, k=1)
    A = A + A.T                                   # symmetric, zero diagonal

    # sparse-ish node attributes (zeros exercise the Jaccard filtering path)
    vals = jax.random.normal(k_feat, (N, F), jnp.float32)
    keep = jax.random.uniform(k_mask, (N, F)) > 0.4
    X = jnp.where(keep, vals, 0.0)

    # (for fidelity with the torch API: forward(x, edge_index) — densify glue)
    import numpy as np
    rows, cols = np.nonzero(np.asarray(A))
    edge_index = jnp.stack([jnp.asarray(rows, jnp.int32),
                            jnp.asarray(cols, jnp.int32)], axis=0)
    A_dense = edge_index_to_dense(edge_index, N)

    params = init_params(k_par, F, H)

    struct_reconstructed, x_hat = dominant_forward(A_dense, X, params)
    jax.block_until_ready((struct_reconstructed, x_hat))

    assert struct_reconstructed.shape == (N, N)
    assert x_hat.shape == (N, F)
    print("KERNEL_OK")
</pallas_src>

<mosaic_0001>
module attributes {stable_mosaic.version = 11 : i64} {
  func.func @_dominant_kernel(%arg0: memref<128x128xf32, #tpu.memory_space<vmem>>, %arg1: memref<128x128xf32, #tpu.memory_space<vmem>>, %arg2: memref<128x128xbf16, #tpu.memory_space<vmem>>, %arg3: memref<1x128xf32, #tpu.memory_space<vmem>>, %arg4: memref<128x128xbf16, #tpu.memory_space<vmem>>, %arg5: memref<1x128xf32, #tpu.memory_space<vmem>>, %arg6: memref<128x256xbf16, #tpu.memory_space<vmem>>, %arg7: memref<1x256xf32, #tpu.memory_space<vmem>>, %arg8: memref<128x128xbf16, #tpu.memory_space<vmem>>, %arg9: memref<1x128xf32, #tpu.memory_space<vmem>>, %arg10: memref<128x128xf32, #tpu.memory_space<vmem>>, %arg11: memref<128x128xf32, #tpu.memory_space<vmem>>) attributes {dimension_semantics = [], scalar_prefetch = 0 : i64, scratch_operands = 0 : i64, tpu.core_type = #tpu.core_type<tc>} {
    %c0 = arith.constant 0 : index
    %c0_0 = arith.constant 0 : index
    %0 = vector.load %arg0[%c0, %c0_0] : memref<128x128xf32, #tpu.memory_space<vmem>>, vector<128x128xf32>
    %c0_1 = arith.constant 0 : index
    %c0_2 = arith.constant 0 : index
    %1 = vector.load %arg1[%c0_1, %c0_2] : memref<128x128xf32, #tpu.memory_space<vmem>>, vector<128x128xf32>
    %cst = arith.constant 0.000000e+00 : f32
    %2 = vector.broadcast %cst : f32 to vector<128x128xf32>
    %3 = arith.cmpf one, %1, %2 : vector<128x128xf32>
    %4 = arith.extui %3 : vector<128x128xi1> to vector<128x128xi32>
    %5 = arith.sitofp %4 : vector<128x128xi32> to vector<128x128xf32>
    %cst_3 = arith.constant dense<0.000000e+00> : vector<128xf32>
    %6 = vector.multi_reduction <add>, %5, %cst_3 [1] : vector<128x128xf32> to vector<128xf32>
    %7 = vector.shape_cast %6 : vector<128xf32> to vector<128x1xf32>
    %cst_4 = arith.constant dense<0.000000e+00> : vector<128x128xf32>
    %8 = tpu.matmul %5, %5, %cst_4 {dimension_numbers = #tpu.dot_dimension_numbers<[1], [1], [0], [0], [0, 0, 1, 0], [], []>} : vector<128x128xf32>, vector<128x128xf32>, vector<128x128xf32> -> vector<128x128xf32>
    %9 = tpu.transpose %7, [1, 0] : vector<128x1xf32> -> vector<1x128xf32>
    %10 = vector.broadcast %7 : vector<128x1xf32> to vector<128x128xf32>
    %11 = vector.broadcast %9 : vector<1x128xf32> to vector<128x128xf32>
    %12 = arith.addf %10, %11 : vector<128x128xf32>
    %13 = arith.subf %12, %8 : vector<128x128xf32>
    %cst_5 = arith.constant 0.00999999977 : f32
    %14 = vector.broadcast %cst_5 : f32 to vector<128x128xf32>
    %15 = arith.mulf %14, %13 : vector<128x128xf32>
    %16 = arith.cmpf ogt, %8, %15 : vector<128x128xf32>
    %17 = arith.extui %16 : vector<128x128xi1> to vector<128x128xi32>
    %18 = arith.sitofp %17 : vector<128x128xi32> to vector<128x128xf32>
    %19 = arith.mulf %0, %18 : vector<128x128xf32>
    %cst_6 = arith.constant dense<0.000000e+00> : vector<128xf32>
    %20 = vector.multi_reduction <add>, %19, %cst_6 [1] : vector<128x128xf32> to vector<128xf32>
    %21 = vector.shape_cast %20 : vector<128xf32> to vector<128x1xf32>
    %cst_7 = arith.constant 1.000000e+00 : f32
    %22 = vector.broadcast %cst_7 : f32 to vector<128x1xf32>
    %23 = arith.addf %21, %22 : vector<128x1xf32>
    %24 = math.rsqrt %23 : vector<128x1xf32>
    %25 = arith.mulf %24, %24 : vector<128x1xf32>
    %26 = vector.broadcast %24 : vector<128x1xf32> to vector<128x128xf32>
    %27 = arith.mulf %26, %19 : vector<128x128xf32>
    %28 = tpu.transpose %24, [1, 0] : vector<128x1xf32> -> vector<1x128xf32>
    %29 = vector.broadcast %28 : vector<1x128xf32> to vector<128x128xf32>
    %30 = arith.mulf %27, %29 : vector<128x128xf32>
    %31 = arith.truncf %30 : vector<128x128xf32> to vector<128x128xbf16>
    %32 = arith.truncf %1 : vector<128x128xf32> to vector<128x128xbf16>
    %c0_8 = arith.constant 0 : index
    %c0_9 = arith.constant 0 : index
    %33 = vector.load %arg2[%c0_8, %c0_9] : memref<128x128xbf16, #tpu.memory_space<vmem>>, vector<128x128xbf16>
    %c0_10 = arith.constant 0 : index
    %c0_11 = arith.constant 0 : index
    %34 = vector.load %arg3[%c0_10, %c0_11] : memref<1x128xf32, #tpu.memory_space<vmem>>, vector<1x128xf32>
    %cst_12 = arith.constant dense<0.000000e+00> : vector<128x128xf32>
    %35 = tpu.matmul %32, %33, %cst_12 {dimension_numbers = #tpu.dot_dimension_numbers<[1], [0], [0], [1], [0, 0, 1, 1], [], []>} : vector<128x128xbf16>, vector<128x128xbf16>, vector<128x128xf32> -> vector<128x128xf32>
    %36 = arith.truncf %35 : vector<128x128xf32> to vector<128x128xbf16>
    %cst_13 = arith.constant dense<0.000000e+00> : vector<128x128xf32>
    %37 = tpu.matmul %31, %36, %cst_13 {dimension_numbers = #tpu.dot_dimension_numbers<[1], [0], [0], [1], [0, 0, 1, 1], [], []>} : vector<128x128xbf16>, vector<128x128xbf16>, vector<128x128xf32> -> vector<128x128xf32>
    %38 = vector.broadcast %25 : vector<128x1xf32> to vector<128x128xf32>
    %39 = arith.mulf %38, %35 : vector<128x128xf32>
    %40 = arith.addf %37, %39 : vector<128x128xf32>
    %41 = vector.broadcast %34 : vector<1x128xf32> to vector<128x128xf32>
    %42 = arith.addf %40, %41 : vector<128x128xf32>
    %cst_14 = arith.constant 0.000000e+00 : f32
    %43 = vector.broadcast %cst_14 : f32 to vector<128x128xf32>
    %44 = arith.maximumf %42, %43 : vector<128x128xf32>
    %45 = arith.truncf %44 : vector<128x128xf32> to vector<128x128xbf16>
    %c0_15 = arith.constant 0 : index
    %c0_16 = arith.constant 0 : index
    %46 = vector.load %arg4[%c0_15, %c0_16] : memref<128x128xbf16, #tpu.memory_space<vmem>>, vector<128x128xbf16>
    %c0_17 = arith.constant 0 : index
    %c0_18 = arith.constant 0 : index
    %47 = vector.load %arg5[%c0_17, %c0_18] : memref<1x128xf32, #tpu.memory_space<vmem>>, vector<1x128xf32>
    %cst_19 = arith.constant dense<0.000000e+00> : vector<128x128xf32>
    %48 = tpu.matmul %45, %46, %cst_19 {dimension_numbers = #tpu.dot_dimension_numbers<[1], [0], [0], [1], [0, 0, 1, 1], [], []>} : vector<128x128xbf16>, vector<128x128xbf16>, vector<128x128xf32> -> vector<128x128xf32>
    %49 = arith.truncf %48 : vector<128x128xf32> to vector<128x128xbf16>
    %cst_20 = arith.constant dense<0.000000e+00> : vector<128x128xf32>
    %50 = tpu.matmul %31, %49, %cst_20 {dimension_numbers = #tpu.dot_dimension_numbers<[1], [0], [0], [1], [0, 0, 1, 1], [], []>} : vector<128x128xbf16>, vector<128x128xbf16>, vector<128x128xf32> -> vector<128x128xf32>
    %51 = vector.broadcast %25 : vector<128x1xf32> to vector<128x128xf32>
    %52 = arith.mulf %51, %48 : vector<128x128xf32>
    %53 = arith.addf %50, %52 : vector<128x128xf32>
    %54 = vector.broadcast %47 : vector<1x128xf32> to vector<128x128xf32>
    %55 = arith.addf %53, %54 : vector<128x128xf32>
    %cst_21 = arith.constant 0.000000e+00 : f32
    %56 = vector.broadcast %cst_21 : f32 to vector<128x128xf32>
    %57 = arith.maximumf %55, %56 : vector<128x128xf32>
    %58 = arith.truncf %57 : vector<128x128xf32> to vector<128x128xbf16>
    %c0_22 = arith.constant 0 : index
    %c0_23 = arith.constant 0 : index
    %59 = vector.load %arg6[%c0_22, %c0_23] : memref<128x256xbf16, #tpu.memory_space<vmem>>, vector<128x256xbf16>
    %c0_24 = arith.constant 0 : index
    %c0_25 = arith.constant 0 : index
    %60 = vector.load %arg7[%c0_24, %c0_25] : memref<1x256xf32, #tpu.memory_space<vmem>>, vector<1x256xf32>
    %cst_26 = arith.constant dense<0.000000e+00> : vector<128x256xf32>
    %61 = tpu.matmul %58, %59, %cst_26 {dimension_numbers = #tpu.dot_dimension_numbers<[1], [0], [0], [1], [0, 0, 1, 1], [], []>} : vector<128x128xbf16>, vector<128x256xbf16>, vector<128x256xf32> -> vector<128x256xf32>
    %62 = arith.truncf %61 : vector<128x256xf32> to vector<128x256xbf16>
    %cst_27 = arith.constant dense<0.000000e+00> : vector<128x256xf32>
    %63 = tpu.matmul %31, %62, %cst_27 {dimension_numbers = #tpu.dot_dimension_numbers<[1], [0], [0], [1], [0, 0, 1, 1], [], []>} : vector<128x128xbf16>, vector<128x256xbf16>, vector<128x256xf32> -> vector<128x256xf32>
    %64 = vector.broadcast %25 : vector<128x1xf32> to vector<128x256xf32>
    %65 = arith.mulf %64, %61 : vector<128x256xf32>
    %66 = arith.addf %63, %65 : vector<128x256xf32>
    %67 = vector.broadcast %60 : vector<1x256xf32> to vector<128x256xf32>
    %68 = arith.addf %66, %67 : vector<128x256xf32>
    %cst_28 = arith.constant 0.000000e+00 : f32
    %69 = vector.broadcast %cst_28 : f32 to vector<128x256xf32>
    %70 = arith.maximumf %68, %69 : vector<128x256xf32>
    %71 = vector.extract_strided_slice %70 {offsets = [0, 0], sizes = [128, 128], strides = [1, 1]} : vector<128x256xf32> to vector<128x128xf32>
    %72 = vector.extract_strided_slice %70 {offsets = [0, 128], sizes = [128, 128], strides = [1, 1]} : vector<128x256xf32> to vector<128x128xf32>
    %73 = arith.truncf %71 : vector<128x128xf32> to vector<128x128xbf16>
    %c0_29 = arith.constant 0 : index
    %c0_30 = arith.constant 0 : index
    %74 = vector.load %arg8[%c0_29, %c0_30] : memref<128x128xbf16, #tpu.memory_space<vmem>>, vector<128x128xbf16>
    %c0_31 = arith.constant 0 : index
    %c0_32 = arith.constant 0 : index
    %75 = vector.load %arg9[%c0_31, %c0_32] : memref<1x128xf32, #tpu.memory_space<vmem>>, vector<1x128xf32>
    %cst_33 = arith.constant dense<0.000000e+00> : vector<128x128xf32>
    %76 = tpu.matmul %73, %74, %cst_33 {dimension_numbers = #tpu.dot_dimension_numbers<[1], [0], [0], [1], [0, 0, 1, 1], [], []>} : vector<128x128xbf16>, vector<128x128xbf16>, vector<128x128xf32> -> vector<128x128xf32>
    %77 = arith.truncf %76 : vector<128x128xf32> to vector<128x128xbf16>
    %cst_34 = arith.constant dense<0.000000e+00> : vector<128x128xf32>
    %78 = tpu.matmul %31, %77, %cst_34 {dimension_numbers = #tpu.dot_dimension_numbers<[1], [0], [0], [1], [0, 0, 1, 1], [], []>} : vector<128x128xbf16>, vector<128x128xbf16>, vector<128x128xf32> -> vector<128x128xf32>
    %79 = vector.broadcast %25 : vector<128x1xf32> to vector<128x128xf32>
    %80 = arith.mulf %79, %76 : vector<128x128xf32>
    %81 = arith.addf %78, %80 : vector<128x128xf32>
    %82 = vector.broadcast %75 : vector<1x128xf32> to vector<128x128xf32>
    %83 = arith.addf %81, %82 : vector<128x128xf32>
    %cst_35 = arith.constant 0.000000e+00 : f32
    %84 = vector.broadcast %cst_35 : f32 to vector<128x128xf32>
    %85 = arith.maximumf %83, %84 : vector<128x128xf32>
    %86 = arith.truncf %72 : vector<128x128xf32> to vector<128x128xbf16>
    %cst_36 = arith.constant dense<0.000000e+00> : vector<128x128xf32>
    %87 = tpu.matmul %86, %86, %cst_36 {dimension_numbers = #tpu.dot_dimension_numbers<[1], [1], [0], [0], [0, 0, 1, 0], [], []>} : vector<128x128xbf16>, vector<128x128xbf16>, vector<128x128xf32> -> vector<128x128xf32>
    %c0_37 = arith.constant 0 : index
    %c0_38 = arith.constant 0 : index
    %88 = vector.load %arg10[%c0_37, %c0_38] : memref<128x128xf32, #tpu.memory_space<vmem>>, vector<128x128xf32>
    tpu.vector_store %arg10[%c0_37, %c0_38], %87 {strides = array<i32>} : memref<128x128xf32, #tpu.memory_space<vmem>>, vector<128x128xf32>,
    %c0_39 = arith.constant 0 : index
    %c0_40 = arith.constant 0 : index
    %89 = vector.load %arg11[%c0_39, %c0_40] : memref<128x128xf32, #tpu.memory_space<vmem>>, vector<128x128xf32>
    tpu.vector_store %arg11[%c0_39, %c0_40], %85 {strides = array<i32>} : memref<128x128xf32, #tpu.memory_space<vmem>>, vector<128x128xf32>,
    return
  }
}

</mosaic_0001>

<bundles_post_ra>
// kernel: dominant_forward.1
= control target key start
LH: loop header
LB: loop body
LE: loop exit
PB: predicated region body
PF: predicated region fallthrough
CT: control target
= control target key end

     0   :  { %v2837_v5 = vmov 1.0   ;;  %v2838_v6 = vmov 0.0   ;;  %s4294_s0 = inlined_call_operand.vmem [shape: f32[128,128], index: 0, kind: input, shape index: {}]   ;;  %s4295_s1 = inlined_call_operand.vmem [shape: f32[128,128], index: 1, kind: input, shape index: {}]   ;;  %s4296_s2 = inlined_call_operand.vmem [shape: bf16[128,128], index: 2, kind: input, shape index: {}]   ;;  %s4297_s3 = inlined_call_operand.vmem [shape: f32[1,128], index: 3, kind: input, shape index: {}]   ;;  %s4298_s4 = inlined_call_operand.vmem [shape: bf16[128,128], index: 4, kind: input, shape index: {}]   ;;  %s4299_s5 = inlined_call_operand.vmem [shape: f32[1,128], index: 5, kind: input, shape index: {}]   ;;  %s4300_s6 = inlined_call_operand.vmem [shape: bf16[128,256], index: 6, kind: input, shape index: {}]   ;;  %s4301_s7 = inlined_call_operand.vmem [shape: f32[1,256], index: 7, kind: input, shape index: {}]   ;;  %s4302_s8 = inlined_call_operand.vmem [shape: bf16[128,128], index: 8, kind: input, shape index: {}]   ;;  %s4303_s9 = inlined_call_operand.vmem [shape: f32[1,128], index: 9, kind: input, shape index: {}]   ;;  %s4304_s10 = inlined_call_operand.hbm [shape: f32[128,128], index: 10, kind: output, shape index: {0}]   ;;  %s4305_s11 = inlined_call_operand.vmem [shape: f32[128,128], index: 11, kind: output, shape index: {1}]  }
   0x1   :  { %v2906_v0 = vld [vmem:[%s4295_s1 + $0x78] sm:$0xff]  ;;  %v2911_v1 = vld [vmem:[%s4295_s1] sm:$0xff]  ;;  %v2916_v2 = vld [vmem:[%s4295_s1 + $0x70] sm:$0xff] }
   0x2   :  { %vm86_vm0 = vcmp.ne.f32.partialorder %v2906_v0, 0.0  ;;  %vm71_vm1 = vcmp.ne.f32.partialorder %v2911_v1, 0.0  ;;  %vm85_vm2 = vcmp.ne.f32.partialorder %v2916_v2, 0.0  ;;  %v2924_v3 = vld [vmem:[%s4295_s1 + $0x8] sm:$0xff]  ;;  %v2929_v4 = vld [vmem:[%s4295_s1 + $0x10] sm:$0xff]  ;;  %v2947_v9 = vld [vmem:[%s4295_s1 + $0x18] sm:$0xff] }
   0x3   :  { %2449 = vmatprep.subr.msk.mxu0 %vm86_vm0, %v2837_v5  ;;  %v2198_v7 = vsel %vm71_vm1, 1.0, %v2838_v6  ;;  %vm72_vm3 = vcmp.ne.f32.partialorder %v2924_v3, 0.0  ;;  %v2941_v8 = vld [vmem:[%s4295_s1 + $0x68] sm:$0xff]  ;;  %vm73_vm4 = vcmp.ne.f32.partialorder %v2929_v4, 0.0  ;;  %2481 = vmatprep.mubr.msk.f32.mxu0 %vm71_vm1, %v2837_v5  ;;  %v2961_v11 = vld [vmem:[%s4295_s1 + $0x60] sm:$0xff]  ;;  %vm74_vm5 = vcmp.ne.f32.partialorder %v2947_v9, 0.0 }
   0x4   :  { %2450 = vmatpush3.xpose.msk.msra.mxu0 %vm86_vm0, %v2837_v5  ;;  %119 = vadd.xlane.f32.xlu0 %v2198_v7  ;;  %v2200_v10 = vsel %vm73_vm4, 1.0, %v2838_v6  ;;  %v2967_v12 = vld [vmem:[%s4295_s1 + $0x20] sm:$0xff]  ;;  %v2199_v13 = vsel %vm72_vm3, 1.0, %v2838_v6  ;;  %v2978_v14 = vld [vmem:[%s4295_s1 + $0x58] sm:$0xff]  ;;  %v2984_v15 = vld [vmem:[%s4295_s1 + $0x28] sm:$0xff]  ;;  %vm84_vm7 = vcmp.ne.f32.partialorder %v2941_v8, 0.0 }
   0x5   :  { %2451 = vmatprep.subr.msk.mxu0 %vm85_vm2, %v2837_v5  ;;  %123 = vadd.xlane.f32.xlu1 %v2200_v10  ;;  %vm75_vm6 = vcmp.ne.f32.partialorder %v2967_v12, 0.0  ;;  %v2989_v16 = vld [vmem:[%s4295_s1 + $0x48] sm:$0xff]  ;;  %v2201_v17 = vsel %vm74_vm5, 1.0, %v2838_v6  ;;  %vm76_vm8 = vcmp.ne.f32.partialorder %v2984_v15, 0.0  ;;  %v2999_v18 = vld [vmem:[%s4295_s1 + $0x30] sm:$0xff]  ;;  %v3004_v19 = vld [vmem:[%s4295_s1 + $0x40] sm:$0xff] }
   0x6   :  { %vm83_vm9 = vcmp.ne.f32.partialorder %v2961_v11, 0.0  ;;  %v3010_v20 = vld [vmem:[%s4295_s1 + $0x50] sm:$0xff]  ;;  %vm77_vm10 = vcmp.ne.f32.partialorder %v2999_v18, 0.0  ;;  %v3016_v21 = vld [vmem:[%s4295_s1 + $0x38] sm:$0xff]  ;;  %vm82_vm11 = vcmp.ne.f32.partialorder %v2978_v14, 0.0  ;;  %v2202_v22 = vsel %vm75_vm6, 1.0, %v2838_v6 }
   0x7   :  { %vm80_vm12 = vcmp.ne.f32.partialorder %v2989_v16, 0.0  ;;  %vm78_vm13 = vcmp.ne.f32.partialorder %v3016_v21, 0.0  ;;  %v2203_v23 = vsel %vm76_vm8, 1.0, %v2838_v6  ;;  %v2204_v24 = vsel %vm77_vm10, 1.0, %v2838_v6 }
   0x8   :  { %2452 = vmatpush3.xpose.msk.msra.mxu0 %vm85_vm2, %v2837_v5  ;;  %121 = vadd.xlane.f32.xlu0 %v2199_v13  ;;  %vm79_vm14 = vcmp.ne.f32.partialorder %v3004_v19, 0.0  ;;  %v2207_v25 = vsel %vm80_vm12, 1.0, %v2838_v6  ;;  %vm81_vm15 = vcmp.ne.f32.partialorder %v3010_v20, 0.0  ;;  %v2205_v26 = vsel %vm78_vm13, 1.0, %v2838_v6 }
   0x9   :  { %2453 = vmatprep.subr.msk.mxu0 %vm84_vm7, %v2837_v5  ;;  %125 = vadd.xlane.f32.xlu1 %v2201_v17  ;;  %v2206_v27 = vsel %vm79_vm14, 1.0, %v2838_v6  ;;  %v2208_v28 = vsel %vm81_vm15, 1.0, %v2838_v6  ;;  %v2209_v29 = vsel %vm82_vm11, 1.0, %v2838_v6  ;;  %v2210_v30 = vsel %vm83_vm9, 1.0, %v2838_v6 }
   0xa   :  { %v2211_v31 = vsel %vm84_vm7, 1.0, %v2838_v6  ;;  %v2212_v32 = vsel %vm85_vm2, 1.0, %v2838_v6  ;;  %v2213_v33 = vsel %vm86_vm0, 1.0, %v2838_v6 }
   0xc   :  { %2454 = vmatpush3.xpose.msk.msra.mxu0 %vm84_vm7, %v2837_v5  ;;  %127 = vadd.xlane.f32.xlu0 %v2202_v22 }
   0xd   :  { %2455 = vmatprep.subr.msk.mxu0 %vm83_vm9, %v2837_v5  ;;  %129 = vadd.xlane.f32.xlu1 %v2203_v23 }
  0x10   :  { %2456 = vmatpush3.xpose.msk.msra.mxu0 %vm83_vm9, %v2837_v5  ;;  %131 = vadd.xlane.f32.xlu0 %v2204_v24 }
  0x11   :  { %2457 = vmatprep.subr.msk.mxu0 %vm82_vm11, %v2837_v5  ;;  %133 = vadd.xlane.f32.xlu1 %v2205_v26 }
  0x14   :  { %2458 = vmatpush3.xpose.msk.msra.mxu0 %vm82_vm11, %v2837_v5  ;;  %135 = vadd.xlane.f32.xlu0 %v2206_v27 }
  0x15   :  { %2459 = vmatprep.subr.msk.mxu0 %vm81_vm15, %v2837_v5  ;;  %137 = vadd.xlane.f32.xlu1 %v2207_v25 }
  0x18   :  { %2460 = vmatpush3.xpose.msk.msra.mxu0 %vm81_vm15, %v2837_v5  ;;  %139 = vadd.xlane.f32.xlu0 %v2208_v28 }
  0x19   :  { %2461 = vmatprep.subr.msk.mxu0 %vm80_vm12, %v2837_v5  ;;  %141 = vadd.xlane.f32.xlu1 %v2209_v29 }
  0x1c   :  { %2462 = vmatpush3.xpose.msk.msra.mxu0 %vm80_vm12, %v2837_v5  ;;  %143 = vadd.xlane.f32.xlu0 %v2210_v30 }
  0x1d   :  { %2463 = vmatprep.subr.msk.mxu0 %vm79_vm14, %v2837_v5  ;;  %145 = vadd.xlane.f32.xlu1 %v2211_v31 }
  0x1e   :  { %17 = vsyncpa [#allocation3], 0  ;;  %v2735_v34 = vld [vmem:[%s4296_s2 + $0x38] sm:$0xff]   ;;  %v2736_v35 = vld [vmem:[%s4296_s2 + $0x30] sm:$0xff]   ;;  %v600_v36 = vpack.c.bf16 %v2924_v3, %v2911_v1  ;;  %v601_v43 = vpack.c.bf16 %v2947_v9, %v2929_v4  ;;  %v602_v44 = vpack.c.bf16 %v2984_v15, %v2967_v12  ;;  %v603_v45 = vpack.c.bf16 %v3016_v21, %v2999_v18 }
  0x1f   :  { %2505 = vmatprep.subr.bf16.mxu1 %v2735_v34  ;;  %v2737_v37 = vld [vmem:[%s4296_s2 + $0x28] sm:$0xff]   ;;  %v2738_v38 = vld [vmem:[%s4296_s2 + $0x20] sm:$0xff]   ;;  %v2739_v39 = vld [vmem:[%s4296_s2 + $0x18] sm:$0xff]   ;;  %v604_v46 = vpack.c.bf16 %v2989_v16, %v3004_v19  ;;  %v605_v47 = vpack.c.bf16 %v2978_v14, %v3010_v20  ;;  %v606_v52 = vpack.c.bf16 %v2941_v8, %v2961_v11  ;;  %v607_v53 = vpack.c.bf16 %v2906_v0, %v2916_v2 }
  0x20   :  { %2464 = vmatpush3.xpose.msk.msra.mxu0 %vm79_vm14, %v2837_v5  ;;  %147 = vadd.xlane.f32.xlu0 %v2212_v32  ;;  %v2740_v40 = vld [vmem:[%s4296_s2 + $0x10] sm:$0xff]   ;;  %v2741_v41 = vld [vmem:[%s4296_s2 + $0x8] sm:$0xff]   ;;  %v2742_v42 = vld [vmem:[%s4296_s2] sm:$0xff]   ;;  %v328_v2 = vlaneseq }
  0x21   :  { %2465 = vmatprep.subr.msk.mxu0 %vm78_vm13, %v2837_v5  ;;  %149 = vadd.xlane.f32.xlu1 %v2213_v33  ;;  %v39_v19 = vld [vmem:[%s4294_s0] sm:$0xff]  ;;  %v40_v28 = vld [vmem:[%s4294_s0 + $0x8] sm:$0xff] }
  0x22   :  { %2506 = vmatpush3.bf16.msra.mxu1 %v2735_v34  ;;  %2521 = vmatprep.mubr.bf16.mxu1 %v600_v36  ;;  %v3258_v4 = vshrl.u32 %v328_v2, 7 }
  0x23   :  { %2507 = vmatprep.subr.bf16.mxu1 %v2736_v35 }
  0x24   :  { %2466 = vmatpush3.xpose.msk.msra.mxu0 %vm78_vm13, %v2837_v5  ;;  %4320 = vst [vmem:[#allocation5_spill] sm:$0xff] %v3258_v4  ;;  %v3261_v7 = vsub.s32 0, %v3258_v4 }
  0x25   :  { %2467 = vmatprep.subr.msk.mxu0 %vm77_vm10, %v2837_v5 }
  0x26   :  { %2508 = vmatpush3.bf16.msra.mxu1 %v2736_v35  ;;  %4321 = vst [vmem:[#allocation6_spill] sm:$0xff] %v3261_v7  ;;  %v41_v35 = vld [vmem:[%s4294_s0 + $0x10] sm:$0xff] }
  0x27   :  { %2509 = vmatprep.subr.bf16.mxu1 %v2737_v37 }
  0x28   :  { %2468 = vmatpush3.xpose.msk.msra.mxu0 %vm77_vm10, %v2837_v5 }
  0x29   :  { %2469 = vmatprep.subr.msk.mxu0 %vm76_vm8, %v2837_v5 }
  0x2a   :  { %2510 = vmatpush3.bf16.msra.mxu1 %v2737_v37 }
  0x2b   :  { %2511 = vmatprep.subr.bf16.mxu1 %v2738_v38 }
  0x2c   :  { %2470 = vmatpush3.xpose.msk.msra.mxu0 %vm76_vm8, %v2837_v5 }
  0x2d   :  { %2471 = vmatprep.subr.msk.mxu0 %vm75_vm6, %v2837_v5 }
  0x2e   :  { %2512 = vmatpush3.bf16.msra.mxu1 %v2738_v38 }
  0x2f   :  { %2513 = vmatprep.subr.bf16.mxu1 %v2739_v39 }
  0x30   :  { %2472 = vmatpush3.xpose.msk.msra.mxu0 %vm75_vm6, %v2837_v5 }
  0x31   :  { %2473 = vmatprep.subr.msk.mxu0 %vm74_vm5, %v2837_v5 }
  0x32   :  { %2514 = vmatpush3.bf16.msra.mxu1 %v2739_v39 }
  0x33   :  { %2515 = vmatprep.subr.bf16.mxu1 %v2740_v40 }
  0x34   :  { %2474 = vmatpush3.xpose.msk.msra.mxu0 %vm74_vm5, %v2837_v5 }
  0x35   :  { %2475 = vmatprep.subr.msk.mxu0 %vm73_vm4, %v2837_v5 }
  0x36   :  { %2516 = vmatpush3.bf16.msra.mxu1 %v2740_v40 }
  0x37   :  { %2517 = vmatprep.subr.bf16.mxu1 %v2741_v41 }
  0x38   :  { %2476 = vmatpush3.xpose.msk.msra.mxu0 %vm73_vm4, %v2837_v5 }
  0x39   :  { %2477 = vmatprep.subr.msk.mxu0 %vm72_vm3, %v2837_v5 }
  0x3a   :  { %2518 = vmatpush3.bf16.msra.mxu1 %v2741_v41 }
  0x3b   :  { %2519 = vmatprep.subr.bf16.mxu1 %v2742_v42 }
  0x3c   :  { %2478 = vmatpush3.xpose.msk.msra.mxu0 %vm72_vm3, %v2837_v5 }
  0x3d   :  { %2479 = vmatprep.subr.msk.mxu0 %vm71_vm1, %v2837_v5 }
  0x3e   :  { %2520 = vmatpush3.bf16.msra.mxu1 %v2742_v42  ;;  %v42_v42 = vld [vmem:[%s4294_s0 + $0x18] sm:$0xff] }
  0x40   :  { %2480 = vmatpush3.xpose.msk.msra.mxu0 %vm71_vm1, %v2837_v5 }
  0x41   :  { %2522 = vmatmul.mubr.bf16.vlgmr.msra.gmra.mxu1 %v601_v43 }
  0x42   :  { %2525 = vmatprep.mubr.bf16.mxu1 %v602_v44 }
  0x43   :  { %2482 = vmatmul.mubr.msk.f32.vlgmr.msra.gmra.mxu0 %vm72_vm3, %v2837_v5 }
  0x44   :  { %2484 = vmatprep.mubr.msk.f32.mxu0 %vm73_vm4, %v2837_v5 }
  0x47   :  { %2485 = vmatmul.mubr.msk.f32.gmra.mxu0 %vm74_vm5, %v2837_v5 }
  0x48   :  { %2487 = vmatprep.mubr.msk.f32.mxu0 %vm75_vm6, %v2837_v5 }
  0x49   :  { %2526 = vmatmul.mubr.bf16.gmra.mxu1 %v603_v45 }
  0x4a   :  { %2529 = vmatprep.mubr.bf16.mxu1 %v604_v46 }
  0x4b   :  { %2488 = vmatmul.mubr.msk.f32.gmra.mxu0 %vm76_vm8, %v2837_v5 }
  0x4c   :  { %2490 = vmatprep.mubr.msk.f32.mxu0 %vm77_vm10, %v2837_v5 }
  0x4f   :  { %2491 = vmatmul.mubr.msk.f32.gmra.mxu0 %vm78_vm13, %v2837_v5 }
  0x50   :  { %2493 = vmatprep.mubr.msk.f32.mxu0 %vm79_vm14, %v2837_v5 }
  0x51   :  { %2530 = vmatmul.mubr.bf16.gmra.mxu1 %v605_v47 }
  0x52   :  { %2533 = vmatprep.mubr.bf16.mxu1 %v606_v52 }
  0x53   :  { %2494 = vmatmul.mubr.msk.f32.gmra.mxu0 %vm80_vm12, %v2837_v5 }
  0x54   :  { %2496 = vmatprep.mubr.msk.f32.mxu0 %vm81_vm15, %v2837_v5 }
  0x57   :  { %2497 = vmatmul.mubr.msk.f32.gmra.mxu0 %vm82_vm11, %v2837_v5 }
  0x58   :  { %2499 = vmatprep.mubr.msk.f32.mxu0 %vm83_vm9, %v2837_v5 }
  0x59   :  { %2534 = vmatmul.mubr.bf16.gmra.mxu1 %v607_v53 }
  0x5b   :  { %2500 = vmatmul.mubr.msk.f32.gmra.mxu0 %vm84_vm7, %v2837_v5 }
  0x5c   :  { %2502 = vmatprep.mubr.msk.f32.mxu0 %vm85_vm2, %v2837_v5 }
  0x5f   :  { %2503 = vmatmul.mubr.msk.f32.gmra.mxu0 %vm86_vm0, %v2837_v5 }
  0x8d   :  { %v120_v48 = vpop.xlane.xlu0 %119 }
  0x8e   :  { %296 = vxpose.xlu0.b32.start [1/16] (narrow) %v120_v48, 8  ;;  %v124_v50 = vpop.xlane.xlu1 %123 }
  0x91   :  { %v122_v49 = vpop.xlane.xlu0 %121 }
  0x92   :  { %297 = vxpose.xlu0.b32.cont [2/16] (narrow) %v122_v49, 8  ;;  %v126_v51 = vpop.xlane.xlu1 %125 }
  0x95   :  { %v128_v54 = vpop.xlane.xlu0 %127 }
  0x96   :  { %298 = vxpose.xlu0.b32.cont [3/16] (narrow) %v124_v50, 8  ;;  %v130_v55 = vpop.xlane.xlu1 %129 }
  0x99   :  { %v3231_v56 = vpop.xlane.xlu0 %131 }
  0x9a   :  { %299 = vxpose.xlu0.b32.cont [4/16] (narrow) %v126_v51, 8  ;;  %v134_v57 = vpop.xlane.xlu1 %133 }
  0x9d   :  { %v3234_v58 = vpop.xlane.xlu0 %135 }
  0x9e   :  { %300 = vxpose.xlu0.b32.cont [5/16] (narrow) %v128_v54, 8  ;;  %v3237_v59 = vpop.xlane.xlu1 %137 }
  0xa1   :  { %v3240_v60 = vpop.xlane.xlu0 %139 }
  0xa2   :  { %301 = vxpose.xlu0.b32.cont [6/16] (narrow) %v130_v55, 8  ;;  %v3243_v61 = vpop.xlane.xlu1 %141 }
  0xa5   :  { %v3246_v62 = vpop.xlane.xlu0 %143 }
  0xa6   :  { %302 = vxpose.xlu0.b32.cont [7/16] (narrow) %v3231_v56, 8  ;;  %v3249_v63 = vpop.xlane.xlu1 %145 }
  0xa9   :  { %v3252_v0 = vpop.xlane.xlu0 %147 }
  0xaa   :  { %303 = vxpose.xlu0.b32.cont [8/16] (narrow) %v134_v57, 8  ;;  %v3255_v1 = vpop.xlane.xlu1 %149 }
  0xae   :  { %304 = vxpose.xlu0.b32.cont [9/16] (narrow) %v3234_v58, 8 }
  0xb2   :  { %305 = vxpose.xlu0.b32.cont [10/16] (narrow) %v3237_v59, 8 }
  0xb6   :  { %306 = vxpose.xlu0.b32.cont [11/16] (narrow) %v3240_v60, 8 }
  0xba   :  { %307 = vxpose.xlu0.b32.cont [12/16] (narrow) %v3243_v61, 8 }
  0xbe   :  { %308 = vxpose.xlu0.b32.cont [13/16] (narrow) %v3246_v62, 8 }
  0xc2   :  { %309 = vxpose.xlu0.b32.cont [14/16] (narrow) %v3249_v63, 8 }
  0xc6   :  { %310 = vxpose.xlu0.b32.cont [15/16] (narrow) %v3252_v0, 8 }
  0xca   :  { %311 = vxpose.xlu0.b32.end [16/16] (narrow) %v3255_v1, 8 }
 0x103   :  { %v2483_v3 = vpop.f32.mrf.mxu0 }
 0x105   :  { %v217_v5 = vpop.f32.mrf.mxu0 }
 0x107   :  { %v2486_v8 = vpop.f32.mrf.mxu0 }
 0x109   :  { %v227_v11 = vpop.f32.mrf.mxu0 }
 0x10a   :  { %v312_v9 = vpop.trf.xlu0 }
 0x10b   :  { %v3264_v10 = vrot.slane %v312_v9, %v3261_v7  ;;  %v2489_v15 = vpop.f32.mrf.mxu0 }
 0x10d   :  { %v332_v12 = vadd.f32 %v3264_v10, %v120_v48  ;;  %v333_v14 = vadd.f32 %v3264_v10, %v122_v49  ;;  %v334_v16 = vadd.f32 %v3264_v10, %v124_v50  ;;  %v336_v21 = vadd.f32 %v3264_v10, %v128_v54  ;;  %v237_v22 = vpop.f32.mrf.mxu0  ;;  %v43_v49 = vld [vmem:[%s4294_s0 + $0x20] sm:$0xff] }
 0x10e   :  { %v335_v26 = vadd.f32 %v3264_v10, %v126_v51  ;;  %v337_v30 = vadd.f32 %v3264_v10, %v130_v55  ;;  %v339_v39 = vadd.f32 %v3264_v10, %v134_v57  ;;  %v338_v47 = vadd.f32 %v3264_v10, %v3231_v56  ;;  %v44_v56 = vld [vmem:[%s4294_s0 + $0x28] sm:$0xff] }
 0x10f   :  { %v348_v13 = vsub.f32 %v332_v12, %v217_v5  ;;  %v349_v18 = vsub.f32 %v333_v14, %v2483_v3  ;;  %v350_v20 = vsub.f32 %v334_v16, %v227_v11  ;;  %v352_v31 = vsub.f32 %v336_v21, %v237_v22  ;;  %v2492_v40 = vpop.f32.mrf.mxu0 }
 0x110   :  { %v351_v29 = vsub.f32 %v335_v26, %v2486_v8  ;;  %v353_v37 = vsub.f32 %v337_v30, %v2489_v15  ;;  %v355_v45 = vsub.f32 %v339_v39, %v2492_v40  ;;  %v341_v54 = vadd.f32 %v3264_v10, %v3237_v59  ;;  %v46_v59 = vld [vmem:[%s4294_s0 + $0x38] sm:$0xff] }
 0x111   :  { %v364_v17 = vmul.f32 0.01, %v348_v13  ;;  %v365_v24 = vmul.f32 0.01, %v349_v18  ;;  %v366_v25 = vmul.f32 0.01, %v350_v20  ;;  %v247_v46 = vpop.f32.mrf.mxu0  ;;  %v342_v21 = vadd.f32 %v3264_v10, %v3240_v60 }
 0x112   :  { %v367_v33 = vmul.f32 0.01, %v351_v29  ;;  %v368_v38 = vmul.f32 0.01, %v352_v31  ;;  %v369_v44 = vmul.f32 0.01, %v353_v37  ;;  %v354_v52 = vsub.f32 %v338_v47, %v247_v46 }
 0x113   :  { %vm380_vm0 = vcmp.gt.f32.partialorder %v217_v5, %v364_v17  ;;  %vm381_vm1 = vcmp.gt.f32.partialorder %v2483_v3, %v365_v24  ;;  %vm382_vm2 = vcmp.gt.f32.partialorder %v227_v11, %v366_v25  ;;  %v371_v51 = vmul.f32 0.01, %v355_v45  ;;  %v2495_v53 = vpop.f32.mrf.mxu0  ;;  %v47_v60 = vld [vmem:[%s4294_s0 + $0x40] sm:$0xff]  ;;  %v50_v37 = vld [vmem:[%s4294_s0 + $0x58] sm:$0xff]  ;;  %v49_v45 = vld [vmem:[%s4294_s0 + $0x50] sm:$0xff] }
 0x114   :  { %v2246_v23 = vsel %vm380_vm0, 1.0, %v2838_v6  ;;  %v2247_v32 = vsel %vm381_vm1, 1.0, %v2838_v6  ;;  %v2248_v36 = vsel %vm382_vm2, 1.0, %v2838_v6  ;;  %vm383_vm3 = vcmp.gt.f32.partialorder %v2486_v8, %v367_v33 }
 0x115   :  { %v3275_v27 = vmul.f32 %v2246_v23, %v39_v19  ;;  %v3283_v34 = vmul.f32 %v2247_v32, %v40_v28  ;;  %v3291_v41 = vmul.f32 %v2248_v36, %v41_v35  ;;  %v2249_v43 = vsel %vm383_vm3, 1.0, %v2838_v6  ;;  %v257_v5 = vpop.f32.mrf.mxu0 }
 0x116   :  { %vm384_vm4 = vcmp.gt.f32.partialorder %v237_v22, %v368_v38  ;;  %v3300_v48 = vmul.f32 %v2249_v43, %v42_v42  ;;  %vm385_vm5 = vcmp.gt.f32.partialorder %v2489_v15, %v369_v44  ;;  %vm387_vm6 = vcmp.gt.f32.partialorder %v2492_v40, %v371_v51 }
 0x117   :  { %444 = vadd.xlane.f32.xlu1 %v3275_v27  ;;  %v2250_v50 = vsel %vm384_vm4, 1.0, %v2838_v6  ;;  %v2251_v57 = vsel %vm385_vm5, 1.0, %v2838_v6  ;;  %v370_v2 = vmul.f32 0.01, %v354_v52  ;;  %v357_v3 = vsub.f32 %v341_v54, %v2495_v53  ;;  %v2498_v14 = vpop.f32.mrf.mxu0 }
 0x118   :  { %v3309_v55 = vmul.f32 %v2250_v50, %v43_v49  ;;  %v340_v8 = vadd.f32 %v3264_v10, %v3234_v58  ;;  %v3318_v9 = vmul.f32 %v2251_v57, %v44_v56  ;;  %v2253_v11 = vsel %vm387_vm6, 1.0, %v2838_v6  ;;  %v45_v58 = vld [vmem:[%s4294_s0 + $0x30] sm:$0xff] }
 0x119   :  { %vm386_vm7 = vcmp.gt.f32.partialorder %v247_v46, %v370_v2  ;;  %v373_v12 = vmul.f32 0.01, %v357_v3  ;;  %v343_v15 = vadd.f32 %v3264_v10, %v3243_v61  ;;  %v3327_v16 = vmul.f32 %v2253_v11, %v46_v59  ;;  %v267_v20 = vpop.f32.mrf.mxu0  ;;  %v48_v61 = vld [vmem:[%s4294_s0 + $0x48] sm:$0xff] }
 0x11a   :  { %v356_v13 = vsub.f32 %v340_v8, %v257_v5  ;;  %v2252_v17 = vsel %vm386_vm7, 1.0, %v2838_v6  ;;  %v358_v25 = vsub.f32 %v342_v21, %v267_v20  ;;  %v345_v28 = vadd.f32 %v3264_v10, %v3249_v63  ;;  %v3356_v63 = vpop.f32.mrf.mxu1 }
 0x11b   :  { %446 = vadd.xlane.f32.xlu1 %v3283_v34  ;;  %vm389_vm8 = vcmp.gt.f32.partialorder %v2495_v53, %v373_v12  ;;  %v359_v19 = vsub.f32 %v343_v15, %v2498_v14  ;;  %v3336_v22 = vmul.f32 %v2252_v17, %v45_v58  ;;  %v2501_v26 = vpop.f32.mrf.mxu0  ;;  %v344_v35 = vadd.f32 %v3264_v10, %v3246_v62  ;;  %v52_v53 = vld [vmem:[%s4294_s0 + $0x68] sm:$0xff]  ;;  %v54_v12 = vld [vmem:[%s4294_s0 + $0x78] sm:$0xff]  ;;  %v53_v58 = vld [vmem:[%s4294_s0 + $0x70] sm:$0xff] }
 0x11c   :  { %v372_v18 = vmul.f32 0.01, %v356_v13  ;;  %v2255_v23 = vsel %vm389_vm8, 1.0, %v2838_v6  ;;  %v374_v31 = vmul.f32 0.01, %v358_v25  ;;  %v361_v32 = vsub.f32 %v345_v28, %v2501_v26  ;;  %v3367_v44 = vpop.f32.mrf.mxu1 }
 0x11d   :  { %v375_v24 = vmul.f32 0.01, %v359_v19  ;;  %v3345_v29 = vmul.f32 %v2255_v23, %v48_v61  ;;  %v277_v33 = vpop.f32.mrf.mxu0  ;;  %v347_v43 = vadd.f32 %v3264_v10, %v3255_v1  ;;  %v346_v51 = vadd.f32 %v3264_v10, %v3252_v0  ;;  %v51_v0 = vld [vmem:[%s4294_s0 + $0x60] sm:$0xff] }
 0x11e   :  { %vm388_vm9 = vcmp.gt.f32.partialorder %v257_v5, %v372_v18  ;;  %vm390_vm11 = vcmp.gt.f32.partialorder %v267_v20, %v374_v31  ;;  %v377_v39 = vmul.f32 0.01, %v361_v32  ;;  %v360_v40 = vsub.f32 %v344_v35, %v277_v33  ;;  %v3378_v52 = vpop.f32.mrf.mxu1 }
 0x11f   :  { %448 = vadd.xlane.f32.xlu1 %v3291_v41  ;;  %v2254_v30 = vsel %vm388_vm9, 1.0, %v2838_v6  ;;  %vm391_vm10 = vcmp.gt.f32.partialorder %v2498_v14, %v375_v24  ;;  %v2504_v42 = vpop.f32.mrf.mxu0  ;;  %v2256_v46 = vsel %vm390_vm11, 1.0, %v2838_v6  ;;  %v771_v35 = vpack.c.bf16 %v3378_v52, %v3356_v63 }
 0x120   :  { %v3354_v36 = vmul.f32 %v2254_v30, %v47_v60  ;;  %v2257_v38 = vsel %vm391_vm10, 1.0, %v2838_v6  ;;  %vm393_vm12 = vcmp.gt.f32.partialorder %v2501_v26, %v377_v39  ;;  %v376_v47 = vmul.f32 0.01, %v360_v40  ;;  %v3387_v3 = vpop.f32.mrf.mxu1 }
 0x121   :  { %v3365_v62 = vmul.f32 %v2257_v38, %v50_v37  ;;  %v363_v49 = vsub.f32 %v347_v43, %v2504_v42  ;;  %v287_v50 = vpop.f32.mrf.mxu0  ;;  %v3376_v1 = vmul.f32 %v2256_v46, %v49_v45  ;;  %v2259_v54 = vsel %vm393_vm12, 1.0, %v2838_v6 }
 0x122   :  { %vm392_vm13 = vcmp.gt.f32.partialorder %v277_v33, %v376_v47  ;;  %v362_v57 = vsub.f32 %v346_v51, %v287_v50  ;;  %v3385_v2 = vmul.f32 %v2259_v54, %v52_v53  ;;  %v3394_v8 = vpop.f32.mrf.mxu1  ;;  %v770_v37 = vpack.c.bf16 %v3387_v3, %v3367_v44 }
 0x123   :  { %450 = vadd.xlane.f32.xlu1 %v3300_v48  ;;  %v379_v56 = vmul.f32 0.01, %v363_v49  ;;  %v2258_v10 = vsel %vm392_vm13, 1.0, %v2838_v6 }
 0x124   :  { %v378_v5 = vmul.f32 0.01, %v362_v57  ;;  %v3396_v59 = vmul.f32 %v2258_v10, %v51_v0  ;;  %v3398_v11 = vpop.f32.mrf.mxu1 }
 0x125   :  { %vm395_vm14 = vcmp.gt.f32.partialorder %v2504_v42, %v379_v56 }
 0x126   :  { %v2261_v13 = vsel %vm395_vm14, 1.0, %v2838_v6  ;;  %vm394_vm15 = vcmp.gt.f32.partialorder %v287_v50, %v378_v5  ;;  %v3405_v14 = vpop.f32.mrf.mxu1 }
 0x127   :  { %452 = vadd.xlane.f32.xlu1 %v3309_v55  ;;  %v3407_v15 = vmul.f32 %v2261_v13, %v54_v12  ;;  %v2260_v17 = vsel %vm394_vm15, 1.0, %v2838_v6  ;;  %v773_v32 = vpack.c.bf16 %v3405_v14, %v3394_v8 }
 0x128   :  { %v3414_v18 = vpop.f32.mrf.mxu1  ;;  %v3416_v19 = vmul.f32 %v2260_v17, %v53_v58 }
 0x129   :  { %v772_v33 = vpack.c.bf16 %v3414_v18, %v3398_v11 }
 0x12a   :  { %v3418_v20 = vpop.f32.mrf.mxu1 }
 0x12b   :  { %454 = vadd.xlane.f32.xlu1 %v3318_v9 }
 0x12c   :  { %v3421_v21 = vpop.f32.mrf.mxu1 }
 0x12e   :  { %v3423_v61 = vpop.f32.mrf.mxu1 }
 0x12f   :  { %458 = vadd.xlane.f32.xlu1 %v3327_v16  ;;  %v775_v60 = vpack.c.bf16 %v3423_v61, %v3418_v20 }
 0x130   :  { %v3425_v23 = vpop.f32.mrf.mxu1 }
 0x131   :  { %v774_v31 = vpack.c.bf16 %v3425_v23, %v3421_v21 }
 0x132   :  { %v3427_v24 = vpop.f32.mrf.mxu1 }
 0x133   :  { %456 = vadd.xlane.f32.xlu1 %v3336_v22 }
 0x134   :  { %v3429_v25 = vpop.f32.mrf.mxu1 }
 0x136   :  { %v3431_v6 = vpop.f32.mrf.mxu1 }
 0x137   :  { %462 = vadd.xlane.f32.xlu1 %v3345_v29  ;;  %4322 = vst [vmem:[#allocation7_spill] sm:$0xff] %v3431_v6  ;;  %v777_v26 = vpack.c.bf16 %v3431_v6, %v3427_v24 }
 0x138   :  { %v3435_v28 = vpop.f32.mrf.mxu1 }
 0x139   :  { %2537 = vmatprep.subr.bf16.mxu1 %v777_v26  ;;  %4323 = vst [vmem:[#allocation8_spill] sm:$0xff] %v3435_v28  ;;  %v776_v30 = vpack.c.bf16 %v3435_v28, %v3429_v25 }
 0x13a   :  { %2538 = vmatpush3.bf16.msra.mxu1 %v777_v26 }
 0x13b   :  { %460 = vadd.xlane.f32.xlu1 %v3354_v36  ;;  %2539 = vmatprep.subr.bf16.mxu1 %v776_v30 }
 0x13e   :  { %2540 = vmatpush3.bf16.msra.mxu1 %v776_v30 }
 0x13f   :  { %466 = vadd.xlane.f32.xlu1 %v3365_v62  ;;  %2541 = vmatprep.subr.bf16.mxu1 %v775_v60 }
 0x142   :  { %2542 = vmatpush3.bf16.msra.mxu1 %v775_v60 }
 0x143   :  { %464 = vadd.xlane.f32.xlu1 %v3376_v1  ;;  %2543 = vmatprep.subr.bf16.mxu1 %v774_v31 }
 0x146   :  { %2544 = vmatpush3.bf16.msra.mxu1 %v774_v31 }
 0x147   :  { %470 = vadd.xlane.f32.xlu1 %v3385_v2  ;;  %2545 = vmatprep.subr.bf16.mxu1 %v773_v32 }
 0x14a   :  { %2546 = vmatpush3.bf16.msra.mxu1 %v773_v32 }
 0x14b   :  { %468 = vadd.xlane.f32.xlu1 %v3396_v59  ;;  %2547 = vmatprep.subr.bf16.mxu1 %v772_v33 }
 0x14e   :  { %2548 = vmatpush3.bf16.msra.mxu1 %v772_v33 }
 0x14f   :  { %474 = vadd.xlane.f32.xlu1 %v3407_v15  ;;  %2549 = vmatprep.subr.bf16.mxu1 %v771_v35 }
 0x152   :  { %2550 = vmatpush3.bf16.msra.mxu1 %v771_v35 }
 0x153   :  { %472 = vadd.xlane.f32.xlu1 %v3416_v19  ;;  %2551 = vmatprep.subr.bf16.mxu1 %v770_v37 }
 0x156   :  { %2552 = vmatpush3.bf16.msra.mxu1 %v770_v37 }
 0x1a0   :  { %v445_v38 = vpop.xlane.xlu1 %444 }
 0x1a1   :  { %v476_v39 = vadd.f32 1.0, %v445_v38 }
 0x1a3   :  { %2783 = vrsqrt.f32 %v476_v39 }
 0x1a4   :  { %v447_v40 = vpop.xlane.xlu1 %446 }
 0x1a5   :  { %v477_v42 = vadd.f32 1.0, %v447_v40 }
 0x1a7   :  { %2785 = vrsqrt.f32 %v477_v42  ;;  %v3478_v42 = vld [vmem:[%s4298_s4 + $0x38] sm:$0xff]  }
 0x1a8   :  { %v449_v43 = vpop.xlane.xlu1 %448  ;;  %2569 = vmatprep.subr.bf16.mxu1 %v3478_v42 }
 0x1a9   :  { %v478_v45 = vadd.f32 1.0, %v449_v43 }
 0x1ab   :  { %2787 = vrsqrt.f32 %v478_v45 }
 0x1ac   :  { %v451_v46 = vpop.xlane.xlu1 %450 }
 0x1ad   :  { %v479_v47 = vadd.f32 1.0, %v451_v46 }
 0x1af   :  { %2789 = vrsqrt.f32 %v479_v47 }
 0x1b0   :  { %v3451_v49 = vpop.eup %2783  ;;  %v453_v50 = vpop.xlane.xlu1 %452 }
 0x1b1   :  { %v480_v51 = vadd.f32 1.0, %v453_v50  ;;  %540 = vxpose.xlu1.b32.start [1/16] (narrow) %v3451_v49, 8 }
 0x1b3   :  { %2791 = vrsqrt.f32 %v480_v51 }
 0x1b4   :  { %v3454_v53 = vpop.eup %2785  ;;  %v455_v54 = vpop.xlane.xlu1 %454 }
 0x1b5   :  { %v481_v56 = vadd.f32 1.0, %v455_v54  ;;  %541 = vxpose.xlu1.b32.cont [2/16] (narrow) %v3454_v53, 8 }
 0x1b7   :  { %2793 = vrsqrt.f32 %v481_v56 }
 0x1b8   :  { %v3457_v57 = vpop.eup %2787  ;;  %v459_v0 = vpop.xlane.xlu1 %458 }
 0x1b9   :  { %542 = vxpose.xlu1.b32.cont [3/16] (narrow) %v3457_v57, 8  ;;  %v483_v13 = vadd.f32 1.0, %v459_v0 }
 0x1bc   :  { %v3460_v10 = vpop.eup %2789  ;;  %v457_v5 = vpop.xlane.xlu1 %456 }
 0x1bd   :  { %v482_v12 = vadd.f32 1.0, %v457_v5  ;;  %543 = vxpose.xlu1.b32.cont [4/16] (narrow) %v3460_v10, 8 }
 0x1bf   :  { %2795 = vrsqrt.f32 %v482_v12 }
 0x1c0   :  { %v3463_v58 = vpop.eup %2791  ;;  %v463_v17 = vpop.xlane.xlu1 %462  ;;  %2797 = vrsqrt.f32 %v483_v13 }
 0x1c1   :  { %544 = vxpose.xlu1.b32.cont [5/16] (narrow) %v3463_v58, 8  ;;  %v485_v31 = vadd.f32 1.0, %v463_v17 }
 0x1c4   :  { %v3466_v26 = vpop.eup %2793  ;;  %v461_v60 = vpop.xlane.xlu1 %460 }
 0x1c5   :  { %v484_v30 = vadd.f32 1.0, %v461_v60  ;;  %545 = vxpose.xlu1.b32.cont [6/16] (narrow) %v3466_v26, 8 }
 0x1c7   :  { %2799 = vrsqrt.f32 %v484_v30 }
 0x1c8   :  { %v467_v32 = vpop.xlane.xlu1 %466  ;;  %2801 = vrsqrt.f32 %v485_v31  ;;  %v524_v31 = vmul.f32 %v3451_v49, %v3275_v27 }
 0x1c9   :  { %v487_v38 = vadd.f32 1.0, %v467_v32  ;;  %v525_v32 = vmul.f32 %v3454_v53, %v3283_v34 }
 0x1cc   :  { %v3469_v33 = vpop.eup %2795  ;;  %v465_v35 = vpop.xlane.xlu1 %464 }
 0x1cd   :  { %v486_v37 = vadd.f32 1.0, %v465_v35  ;;  %546 = vxpose.xlu1.b32.cont [7/16] (narrow) %v3469_v33, 8  ;;  %v3472_v39 = vpop.eup %2797  ;;  %v526_v35 = vmul.f32 %v3457_v57, %v3291_v41 }
 0x1ce   :  { %v531_v27 = vmul.f32 %v3472_v39, %v3327_v16 }
 0x1cf   :  { %2803 = vrsqrt.f32 %v486_v37  ;;  %v527_v37 = vmul.f32 %v3460_v10, %v3300_v48 }
 0x1d0   :  { %v471_v40 = vpop.xlane.xlu1 %470  ;;  %2805 = vrsqrt.f32 %v487_v38  ;;  %v528_v38 = vmul.f32 %v3463_v58, %v3309_v55 }
 0x1d1   :  { %547 = vxpose.xlu1.b32.cont [8/16] (narrow) %v3472_v39, 8  ;;  %v489_v47 = vadd.f32 1.0, %v471_v40 }
 0x1d4   :  { %v3481_v43 = vpop.eup %2799  ;;  %v469_v45 = vpop.xlane.xlu1 %468 }
 0x1d5   :  { %v488_v46 = vadd.f32 1.0, %v469_v45  ;;  %548 = vxpose.xlu1.b32.cont [9/16] (narrow) %v3481_v43, 8  ;;  %v3484_v50 = vpop.eup %2801  ;;  %v529_v45 = vmul.f32 %v3466_v26, %v3318_v9  ;;  %v532_v48 = vmul.f32 %v3481_v43, %v3354_v36 }
 0x1d6   :  { %v533_v34 = vmul.f32 %v3484_v50, %v3345_v29 }
 0x1d7   :  { %2807 = vrsqrt.f32 %v488_v46  ;;  %v530_v46 = vmul.f32 %v3469_v33, %v3336_v22 }
 0x1d8   :  { %v475_v51 = vpop.xlane.xlu1 %474  ;;  %2809 = vrsqrt.f32 %v489_v47 }
 0x1d9   :  { %549 = vxpose.xlu1.b32.cont [10/16] (narrow) %v3484_v50, 8  ;;  %v491_v5 = vadd.f32 1.0, %v475_v51 }
 0x1dc   :  { %v3487_v54 = vpop.eup %2803  ;;  %v473_v56 = vpop.xlane.xlu1 %472 }
 0x1dd   :  { %v490_v0 = vadd.f32 1.0, %v473_v56  ;;  %550 = vxpose.xlu1.b32.cont [11/16] (narrow) %v3487_v54, 8  ;;  %v3490_v12 = vpop.eup %2805  ;;  %v534_v55 = vmul.f32 %v3487_v54, %v3376_v1 }
 0x1de   :  { %v535_v9 = vmul.f32 %v3490_v12, %v3365_v62 }
 0x1df   :  { %2811 = vrsqrt.f32 %v490_v0 }
 0x1e0   :  { %2813 = vrsqrt.f32 %v491_v5 }
 0x1e1   :  { %551 = vxpose.xlu1.b32.cont [12/16] (narrow) %v3490_v12, 8 }
 0x1e4   :  { %v3493_v13 = vpop.eup %2807 }
 0x1e5   :  { %552 = vxpose.xlu1.b32.cont [13/16] (narrow) %v3493_v13, 8  ;;  %v3496_v17 = vpop.eup %2809  ;;  %v536_v22 = vmul.f32 %v3493_v13, %v3396_v59 }
 0x1e6   :  { %v537_v16 = vmul.f32 %v3496_v17, %v3385_v2 }
 0x1e9   :  { %553 = vxpose.xlu1.b32.cont [14/16] (narrow) %v3496_v17, 8 }
 0x1ec   :  { %v3499_v60 = vpop.eup %2811 }
 0x1ed   :  { %554 = vxpose.xlu1.b32.cont [15/16] (narrow) %v3499_v60, 8  ;;  %v3502_v30 = vpop.eup %2813  ;;  %v538_v29 = vmul.f32 %v3499_v60, %v3416_v19 }
 0x1ee   :  { %v539_v47 = vmul.f32 %v3502_v30, %v3407_v15 }
 0x1f1   :  { %555 = vxpose.xlu1.b32.end [16/16] (narrow) %v3502_v30, 8 }
 0x231   :  { %v556_v40 = vpop.trf.xlu1 }
 0x232   :  { %v575_v41 = vrot.slane %v556_v40, %v3261_v7 }
 0x234   :  { %v576_v51 = vmul.f32 %v575_v41, %v524_v31  ;;  %v577_v36 = vmul.f32 %v575_v41, %v525_v32  ;;  %v578_v56 = vmul.f32 %v575_v41, %v526_v35  ;;  %v579_v0 = vmul.f32 %v575_v41, %v527_v37  ;;  %v2744_v31 = vld [vmem:[%s4298_s4 + $0x30] sm:$0xff]  }
 0x235   :  { %v580_v1 = vmul.f32 %v575_v41, %v528_v38  ;;  %v581_v5 = vmul.f32 %v575_v41, %v529_v45  ;;  %v582_v40 = vmul.f32 %v575_v41, %v530_v46  ;;  %v583_v62 = vmul.f32 %v575_v41, %v531_v27 }
 0x236   :  { %v3538_v7 = vpack.c.bf16 %v577_v36, %v576_v51  ;;  %v3540_v59 = vpack.c.bf16 %v579_v0, %v578_v56  ;;  %v584_v4 = vmul.f32 %v575_v41, %v532_v48  ;;  %v585_v2 = vmul.f32 %v575_v41, %v533_v34  ;;  %v2749_v48 = vld [vmem:[%s4298_s4 + $0x8] sm:$0xff]  }
 0x237   :  { %v3542_v28 = vpack.c.bf16 %v581_v5, %v580_v1  ;;  %v3544_v19 = vpack.c.bf16 %v583_v62, %v582_v40  ;;  %v586_v6 = vmul.f32 %v575_v41, %v534_v55  ;;  %v587_v15 = vmul.f32 %v575_v41, %v535_v9  ;;  %v2750_v55 = vld [vmem:[%s4298_s4] sm:$0xff]  }
 0x238   :  { %2553 = vmatprep.mubr.bf16.mxu1 %v3538_v7  ;;  %v3550_v32 = vpack.c.bf16 %v585_v2, %v584_v4  ;;  %v588_v35 = vmul.f32 %v575_v41, %v536_v22  ;;  %v589_v37 = vmul.f32 %v575_v41, %v537_v16  ;;  %v590_v38 = vmul.f32 %v575_v41, %v538_v29  ;;  %v2745_v4 = vld [vmem:[%s4298_s4 + $0x28] sm:$0xff]  }
 0x239   :  { %4324 = vst [vmem:[#allocation9_spill] sm:$0xff] %v3544_v19  ;;  %2554 = vmatmul.mubr.bf16.vlgmr.msra.gmra.mxu1 %v3540_v59  ;;  %v3553_v45 = vpack.c.bf16 %v587_v15, %v586_v6  ;;  %v591_v46 = vmul.f32 %v575_v41, %v539_v47  ;;  %v2746_v6 = vld [vmem:[%s4298_s4 + $0x20] sm:$0xff]   ;;  %v2748_v41 = vld [vmem:[%s4298_s4 + $0x10] sm:$0xff]   ;;  %v3586_v9 = vmul.f32 %v3451_v49, %v3451_v49 }
 0x23a   :  { %4325 = vst [vmem:[#allocation10_spill] sm:$0xff] %v3550_v32  ;;  %2557 = vmatprep.mubr.bf16.mxu1 %v3542_v28  ;;  %v3556_v27 = vpack.c.bf16 %v589_v37, %v588_v35  ;;  %2570 = vmatpush3.bf16.msra.mxu1 %v3478_v42  ;;  %v2747_v42 = vld [vmem:[%s4298_s4 + $0x18] sm:$0xff]   ;;  %v3590_v22 = vmul.f32 %v3457_v57, %v3457_v57 }
 0x23b   :  { %4326 = vst [vmem:[#allocation11_spill] sm:$0xff] %v3553_v45  ;;  %v3559_v34 = vpack.c.bf16 %v591_v46, %v590_v38  ;;  %2571 = vmatprep.subr.bf16.mxu1 %v2744_v31  ;;  %4329 = vst [vmem:[#allocation14_spill] sm:$0xff] %v3586_v9  ;;  %v3594_v16 = vmul.f32 %v3460_v10, %v3460_v10  ;;  %v778_v47 = vmul.f32 %v3367_v44, %v3586_v9 }
 0x23c   :  { %4327 = vst [vmem:[#allocation12_spill] sm:$0xff] %v3556_v27  ;;  %v3600_v51 = vmul.f32 %v3454_v53, %v3454_v53  ;;  %v780_v49 = vmul.f32 %v3356_v63, %v3590_v22  ;;  %v3610_v44 = vmul.f32 %v3463_v58, %v3463_v58  ;;  %v3615_v53 = vld [vmem:[%s4297_s3] ss:$0 sm:$0xff]  ;;  %v3619_v5 = vmul.f32 %v3469_v33, %v3469_v33 }
 0x23d   :  { %4328 = vst [vmem:[#allocation13_spill] sm:$0xff] %v3559_v34  ;;  %v781_v57 = vmul.f32 %v3378_v52, %v3594_v16  ;;  %v3623_v40 = vmul.f32 %v3472_v39, %v3472_v39  ;;  %v3632_v33 = vmul.f32 %v3466_v26, %v3466_v26 }
 0x23e   :  { %2572 = vmatpush3.bf16.msra.mxu1 %v2744_v31  ;;  %4330 = vst [vmem:[#allocation15_spill] sm:$0xff] %v3600_v51  ;;  %v779_v10 = vmul.f32 %v3387_v3, %v3600_v51  ;;  %v782_v31 = vmul.f32 %v3398_v11, %v3610_v44  ;;  %v784_v39 = vmul.f32 %v3394_v8, %v3619_v5 }
 0x23f   :  { %2573 = vmatprep.subr.bf16.mxu1 %v2745_v4  ;;  %v785_v46 = vmul.f32 %v3405_v14, %v3623_v40  ;;  %v783_v26 = vmul.f32 %v3414_v18, %v3632_v33  ;;  %v3647_v14 = vmul.f32 %v3487_v54, %v3487_v54  ;;  %v3660_v54 = vmul.f32 %v3484_v50, %v3484_v50 }
 0x241   :  { %2558 = vmatmul.mubr.bf16.gmra.mxu1 %v3544_v19  ;;  %v787_v50 = vmul.f32 %v3425_v23, %v3660_v54 }
 0x242   :  { %2561 = vmatprep.mubr.bf16.mxu1 %v3550_v32  ;;  %2574 = vmatpush3.bf16.msra.mxu1 %v2745_v4 }
 0x243   :  { %2575 = vmatprep.subr.bf16.mxu1 %v2746_v6 }
 0x246   :  { %2576 = vmatpush3.bf16.msra.mxu1 %v2746_v6 }
 0x247   :  { %2577 = vmatprep.subr.bf16.mxu1 %v2747_v42 }
 0x249   :  { %2562 = vmatmul.mubr.bf16.gmra.mxu1 %v3553_v45 }
 0x24a   :  { %2565 = vmatprep.mubr.bf16.mxu1 %v3556_v27  ;;  %2578 = vmatpush3.bf16.msra.mxu1 %v2747_v42 }
 0x24b   :  { %2579 = vmatprep.subr.bf16.mxu1 %v2748_v41 }
 0x24e   :  { %2580 = vmatpush3.bf16.msra.mxu1 %v2748_v41 }
 0x24f   :  { %2581 = vmatprep.subr.bf16.mxu1 %v2749_v48 }
 0x251   :  { %2566 = vmatmul.mubr.bf16.gmra.mxu1 %v3559_v34 }
 0x252   :  { %2582 = vmatpush3.bf16.msra.mxu1 %v2749_v48 }
 0x253   :  { %2583 = vmatprep.subr.bf16.mxu1 %v2750_v55 }
 0x256   :  { %2584 = vmatpush3.bf16.msra.mxu1 %v2750_v55  ;;  %v3643_v55 = vmul.f32 %v3481_v43, %v3481_v43 }
 0x2f9   :  { %v2555_v29 = vpop.f32.mrf.mxu1 }
 0x2fa   :  { %v837_v0 = vadd.f32 %v2555_v29, %v780_v49 }
 0x2fb   :  { %v828_v36 = vpop.f32.mrf.mxu1 }
 0x2fc   :  { %v829_v56 = vadd.f32 %v828_v36, %v778_v47  ;;  %v899_v2 = vadd.f32 %v3615_v53, %v837_v0  ;;  %v3651_v36 = vmul.f32 %v3490_v12, %v3490_v12 }
 0x2fd   :  { %v2556_v1 = vpop.f32.mrf.mxu1 }
 0x2fe   :  { %v840_v63 = vadd.f32 %v2556_v1, %v781_v57  ;;  %v897_v3 = vadd.f32 %v3615_v53, %v829_v56  ;;  %v915_v41 = vmax.f32 %v899_v2, 0.0  ;;  %v786_v1 = vmul.f32 %v3421_v21, %v3643_v55 }
 0x2ff   :  { %v831_v52 = vpop.f32.mrf.mxu1 }
 0x300   :  { %v900_v58 = vadd.f32 %v3615_v53, %v840_v63  ;;  %v832_v62 = vadd.f32 %v831_v52, %v779_v10  ;;  %v913_v4 = vmax.f32 %v897_v3, 0.0  ;;  %v788_v63 = vmul.f32 %v3418_v20, %v3647_v14 }
 0x301   :  { %v2559_v15 = vpop.f32.mrf.mxu1  ;;  %v789_v3 = vmul.f32 %v3423_v61, %v3651_v36 }
 0x302   :  { %v898_v35 = vadd.f32 %v3615_v53, %v832_v62  ;;  %v916_v37 = vmax.f32 %v900_v58, 0.0  ;;  %v853_v48 = vadd.f32 %v2559_v15, %v784_v39 }
 0x303   :  { %v844_v38 = vpop.f32.mrf.mxu1 }
 0x304   :  { %v914_v6 = vmax.f32 %v898_v35, 0.0  ;;  %v845_v42 = vadd.f32 %v844_v38, %v782_v31  ;;  %v930_v47 = vpack.c.bf16 %v916_v37, %v915_v41  ;;  %v903_v43 = vadd.f32 %v3615_v53, %v853_v48 }
 0x305   :  { %v2560_v11 = vpop.f32.mrf.mxu1  ;;  %v3671_v35 = vmul.f32 %v3493_v13, %v3493_v13  ;;  %v3675_v38 = vmul.f32 %v3499_v60, %v3499_v60  ;;  %v3688_v60 = vmul.f32 %v3496_v17, %v3496_v17 }
 0x306   :  { %v856_v29 = vadd.f32 %v2560_v11, %v785_v46  ;;  %v929_v8 = vpack.c.bf16 %v914_v6, %v913_v4  ;;  %v901_v57 = vadd.f32 %v3615_v53, %v845_v42  ;;  %v919_v15 = vmax.f32 %v903_v43, 0.0  ;;  %v4332_v43 = vld [vmem:[#allocation8_spill] sm:$0xff] }
 0x307   :  { %v847_v49 = vpop.f32.mrf.mxu1  ;;  %v3679_v46 = vmul.f32 %v3502_v30, %v3502_v30  ;;  %v790_v41 = vmul.f32 %v3429_v25, %v3671_v35  ;;  %v792_v11 = vmul.f32 %v3427_v24, %v3675_v38  ;;  %v791_v17 = vmul.f32 %v4332_v43, %v3688_v60 }
 0x308   :  { %v904_v18 = vadd.f32 %v3615_v53, %v856_v29  ;;  %v848_v56 = vadd.f32 %v847_v49, %v783_v26  ;;  %2585 = vmatprep.mubr.bf16.mxu1 %v929_v8  ;;  %v917_v58 = vmax.f32 %v901_v57, 0.0  ;;  %v4331_v29 = vld [vmem:[#allocation7_spill] sm:$0xff] }
 0x309   :  { %v2563_v0 = vpop.f32.mrf.mxu1  ;;  %2586 = vmatmul.mubr.bf16.vlgmr.msra.gmra.mxu1 %v930_v47  ;;  %v793_v8 = vmul.f32 %v4331_v29, %v3679_v46 }
 0x30a   :  { %v902_v12 = vadd.f32 %v3615_v53, %v848_v56  ;;  %v920_v10 = vmax.f32 %v904_v18, 0.0  ;;  %v869_v31 = vadd.f32 %v2563_v0, %v788_v63 }
 0x30b   :  { %v860_v52 = vpop.f32.mrf.mxu1 }
 0x30c   :  { %v918_v62 = vmax.f32 %v902_v12, 0.0  ;;  %v861_v2 = vadd.f32 %v860_v52, %v786_v1  ;;  %v932_v61 = vpack.c.bf16 %v920_v10, %v919_v15  ;;  %v907_v13 = vadd.f32 %v3615_v53, %v869_v31 }
 0x30d   :  { %v2564_v21 = vpop.f32.mrf.mxu1 }
 0x30e   :  { %v872_v39 = vadd.f32 %v2564_v21, %v789_v3  ;;  %v931_v37 = vpack.c.bf16 %v918_v62, %v917_v58  ;;  %v905_v4 = vadd.f32 %v3615_v53, %v861_v2  ;;  %v923_v18 = vmax.f32 %v907_v13, 0.0  ;;  %v2765_v13 = vld [vmem:[%s4300_s6 + $0x34] ss:$8 sps:$4 sm:$0xff]  }
 0x30f   :  { %v863_v20 = vpop.f32.mrf.mxu1 }
 0x310   :  { %v908_v23 = vadd.f32 %v3615_v53, %v872_v39  ;;  %v864_v6 = vadd.f32 %v863_v20, %v787_v50  ;;  %2589 = vmatprep.mubr.bf16.mxu1 %v931_v37  ;;  %v921_v47 = vmax.f32 %v905_v4, 0.0  ;;  %v2751_v39 = vld [vmem:[%s4300_s6 + $0x70] ss:$8 sps:$4 sm:$0xff]   ;;  %v2753_v37 = vld [vmem:[%s4300_s6 + $0x74] ss:$8 sps:$4 sm:$0xff]  }
 0x311   :  { %v2567_v42 = vpop.f32.mrf.mxu1  ;;  %2590 = vmatmul.mubr.bf16.gmra.mxu1 %v932_v61  ;;  %1363 = vmatprep.subr.bf16.mxu0 %v2753_v37  ;;  %v2754_v20 = vld [vmem:[%s4300_s6 + $0x60] ss:$8 sps:$4 sm:$0xff]   ;;  %v2759_v61 = vld [vmem:[%s4300_s6 + $0x54] ss:$8 sps:$4 sm:$0xff]   ;;  %v2757_v4 = vld [vmem:[%s4300_s6 + $0x50] ss:$8 sps:$4 sm:$0xff]  }
 0x312   :  { %v906_v30 = vadd.f32 %v3615_v53, %v864_v6  ;;  %v924_v48 = vmax.f32 %v908_v23, 0.0  ;;  %v885_v56 = vadd.f32 %v2567_v42, %v792_v11  ;;  %1364 = vmatpush1.bf16.msra.mxu0 %v2751_v39  ;;  %v2762_v23 = vld [vmem:[%s4300_s6 + $0x44] ss:$8 sps:$4 sm:$0xff]   ;;  %v2760_v6 = vld [vmem:[%s4300_s6 + $0x40] ss:$8 sps:$4 sm:$0xff]   ;;  %v4310_v39 = vmov 0  }
 0x313   :  { %v876_v26 = vpop.f32.mrf.mxu1  ;;  %v2763_v42 = vld [vmem:[%s4300_s6 + $0x30] ss:$8 sps:$4 sm:$0xff]   ;;  %1395 = vmatprep.mubr.bf16.mxu0 %v4310_v39 }
 0x314   :  { %v922_v49 = vmax.f32 %v906_v30, 0.0  ;;  %v877_v57 = vadd.f32 %v876_v26, %v790_v41  ;;  %v934_v10 = vpack.c.bf16 %v924_v48, %v923_v18  ;;  %v911_v3 = vadd.f32 %v3615_v53, %v885_v56 }
 0x315   :  { %v2568_v25 = vpop.f32.mrf.mxu1 }
 0x316   :  { %v888_v0 = vadd.f32 %v2568_v25, %v793_v8  ;;  %v933_v1 = vpack.c.bf16 %v922_v49, %v921_v47  ;;  %v909_v63 = vadd.f32 %v3615_v53, %v877_v57  ;;  %v927_v31 = vmax.f32 %v911_v3, 0.0 }
 0x317   :  { %v879_v12 = vpop.f32.mrf.mxu1 }
 0x318   :  { %v912_v24 = vadd.f32 %v3615_v53, %v888_v0  ;;  %v880_v52 = vadd.f32 %v879_v12, %v791_v17  ;;  %2593 = vmatprep.mubr.bf16.mxu1 %v933_v1  ;;  %v925_v2 = vmax.f32 %v909_v63, 0.0 }
 0x319   :  { %2594 = vmatmul.mubr.bf16.gmra.mxu1 %v934_v10 }
 0x31a   :  { %v910_v58 = vadd.f32 %v3615_v53, %v880_v52  ;;  %v928_v62 = vmax.f32 %v912_v24, 0.0  ;;  %v2756_v53 = vld [vmem:[%s4300_s6 + $0x64] ss:$8 sps:$4 sm:$0xff]  }
 0x31b   :  { %1365 = vmatprep.subr.bf16.mxu0 %v2756_v53 }
 0x31c   :  { %v926_v15 = vmax.f32 %v910_v58, 0.0  ;;  %v936_v50 = vpack.c.bf16 %v928_v62, %v927_v31  ;;  %1366 = vmatpush1.bf16.msra.mxu0 %v2754_v20  ;;  %v2766_v62 = vld [vmem:[%s4300_s6 + $0x20] ss:$8 sps:$4 sm:$0xff]   ;;  %v2769_v31 = vld [vmem:[%s4300_s6 + $0x10] ss:$8 sps:$4 sm:$0xff]  }
 0x31d   :  { %1367 = vmatprep.subr.bf16.mxu0 %v2759_v61 }
 0x31e   :  { %v935_v21 = vpack.c.bf16 %v926_v15, %v925_v2  ;;  %v2768_v2 = vld [vmem:[%s4300_s6 + $0x24] ss:$8 sps:$4 sm:$0xff]   ;;  %v2771_v15 = vld [vmem:[%s4300_s6 + $0x14] ss:$8 sps:$4 sm:$0xff]  }
 0x320   :  { %2597 = vmatprep.mubr.bf16.mxu1 %v935_v21  ;;  %1368 = vmatpush1.bf16.msra.mxu0 %v2757_v4  ;;  %v2772_v21 = vld [vmem:[%s4300_s6] ss:$8 sps:$4 sm:$0xff]  }
 0x321   :  { %2598 = vmatmul.mubr.bf16.gmra.mxu1 %v936_v50  ;;  %1369 = vmatprep.subr.bf16.mxu0 %v2762_v23  ;;  %v2774_v50 = vld [vmem:[%s4300_s6 + $0x4] ss:$8 sps:$4 sm:$0xff]   ;;  %v3810_v4 = vld [vmem:[%s4299_s5] ss:$0 sm:$0xff] }
 0x322   :  { %2617 = vmatprep.mubr.bf16.mxu1 %v3538_v7 }
 0x324   :  { %1370 = vmatpush1.bf16.msra.mxu0 %v2760_v6 }
 0x325   :  { %1371 = vmatprep.subr.bf16.mxu0 %v2765_v13 }
 0x328   :  { %1372 = vmatpush1.bf16.msra.mxu0 %v2763_v42 }
 0x329   :  { %1373 = vmatprep.subr.bf16.mxu0 %v2768_v2 }
 0x32c   :  { %1374 = vmatpush1.bf16.msra.mxu0 %v2766_v62 }
 0x32d   :  { %1375 = vmatprep.subr.bf16.mxu0 %v2771_v15 }
 0x330   :  { %1376 = vmatpush1.bf16.msra.mxu0 %v2769_v31 }
 0x331   :  { %1377 = vmatprep.subr.bf16.mxu0 %v2774_v50 }
 0x334   :  { %1378 = vmatpush1.bf16.msra.mxu0 %v2772_v21 }
 0x3c9   :  { %v2587_v41 = vpop.f32.mrf.mxu1 }
 0x3ca   :  { %v1109_v37 = vmul.f32 %v2587_v41, %v3590_v22 }
 0x3cb   :  { %v3732_v30 = vpop.f32.mrf.mxu1 }
 0x3cc   :  { %v1107_v20 = vmul.f32 %v3732_v30, %v3586_v9 }
 0x3cd   :  { %v3734_v48 = vpop.f32.mrf.mxu1 }
 0x3ce   :  { %v1100_v3 = vpack.c.bf16 %v3734_v48, %v2587_v41  ;;  %v1110_v6 = vmul.f32 %v3734_v48, %v3594_v16 }
 0x3cf   :  { %v3736_v11 = vpop.f32.mrf.mxu1 }
 0x3d0   :  { %v1099_v58 = vpack.c.bf16 %v3736_v11, %v3732_v30 }
 0x3d1   :  { %v3738_v26 = vpop.f32.mrf.mxu1 }
 0x3d2   :  { %v1113_v30 = vmul.f32 %v3738_v26, %v3619_v5 }
 0x3d3   :  { %v3740_v29 = vpop.f32.mrf.mxu1 }
 0x3d4   :  { %v1111_v48 = vmul.f32 %v3740_v29, %v3610_v44 }
 0x3d5   :  { %v3742_v8 = vpop.f32.mrf.mxu1 }
 0x3d6   :  { %v1102_v24 = vpack.c.bf16 %v3742_v8, %v3738_v26  ;;  %v1114_v15 = vmul.f32 %v3742_v8, %v3623_v40 }
 0x3d7   :  { %v3744_v47 = vpop.f32.mrf.mxu1 }
 0x3d8   :  { %v1101_v52 = vpack.c.bf16 %v3744_v47, %v3740_v29 }
 0x3d9   :  { %v3746_v49 = vpop.f32.mrf.mxu1 }
 0x3db   :  { %v3748_v57 = vpop.f32.mrf.mxu1 }
 0x3dd   :  { %v3750_v18 = vpop.f32.mrf.mxu1 }
 0x3de   :  { %v1104_v10 = vpack.c.bf16 %v3750_v18, %v3746_v49 }
 0x3df   :  { %v3752_v56 = vpop.f32.mrf.mxu1 }
 0x3e0   :  { %v1103_v63 = vpack.c.bf16 %v3752_v56, %v3748_v57 }
 0x3e1   :  { %v3754_v25 = vpop.f32.mrf.mxu1 }
 0x3e3   :  { %v3756_v43 = vpop.f32.mrf.mxu1 }
 0x3e5   :  { %v3758_v17 = vpop.f32.mrf.mxu1 }
 0x3e6   :  { %v1106_v0 = vpack.c.bf16 %v3758_v17, %v3754_v25 }
 0x3e7   :  { %v3762_v1 = vpop.f32.mrf.mxu1 }
 0x3e8   :  { %v1105_v12 = vpack.c.bf16 %v3762_v1, %v3756_v43  ;;  %2601 = vmatprep.subr.bf16.mxu1 %v1106_v0 }
 0x3e9   :  { %2602 = vmatpush3.bf16.msra.mxu1 %v1106_v0  ;;  %v1108_v0 = vmul.f32 %v3736_v11, %v3600_v51 }
 0x3ea   :  { %2603 = vmatprep.subr.bf16.mxu1 %v1105_v12 }
 0x3ed   :  { %2604 = vmatpush3.bf16.msra.mxu1 %v1105_v12 }
 0x3ee   :  { %2605 = vmatprep.subr.bf16.mxu1 %v1104_v10 }
 0x3f1   :  { %2606 = vmatpush3.bf16.msra.mxu1 %v1104_v10 }
 0x3f2   :  { %2607 = vmatprep.subr.bf16.mxu1 %v1103_v63 }
 0x3f5   :  { %2608 = vmatpush3.bf16.msra.mxu1 %v1103_v63 }
 0x3f6   :  { %2609 = vmatprep.subr.bf16.mxu1 %v1102_v24 }
 0x3f9   :  { %2610 = vmatpush3.bf16.msra.mxu1 %v1102_v24 }
 0x3fa   :  { %2611 = vmatprep.subr.bf16.mxu1 %v1101_v52 }
 0x3fd   :  { %2612 = vmatpush3.bf16.msra.mxu1 %v1101_v52 }
 0x3fe   :  { %2613 = vmatprep.subr.bf16.mxu1 %v1100_v3 }
 0x401   :  { %2614 = vmatpush3.bf16.msra.mxu1 %v1100_v3 }
 0x402   :  { %2615 = vmatprep.subr.bf16.mxu1 %v1099_v58 }
 0x405   :  { %2616 = vmatpush3.bf16.msra.mxu1 %v1099_v58 }
 0x408   :  { %2618 = vmatmul.mubr.bf16.vlgmr.msra.gmra.mxu1 %v3540_v59 }
 0x409   :  { %2621 = vmatprep.mubr.bf16.mxu1 %v3542_v28 }
 0x410   :  { %2622 = vmatmul.mubr.bf16.gmra.mxu1 %v3544_v19 }
 0x411   :  { %2625 = vmatprep.mubr.bf16.mxu1 %v3550_v32 }
 0x418   :  { %2626 = vmatmul.mubr.bf16.gmra.mxu1 %v3553_v45 }
 0x419   :  { %2629 = vmatprep.mubr.bf16.mxu1 %v3556_v27 }
 0x420   :  { %2630 = vmatmul.mubr.bf16.gmra.mxu1 %v3559_v34 }
 0x421   :  { %1556 = vmatprep.mubr.bf16.mxu1 %v4310_v39 }
 0x4c8   :  { %v2619_v53 = vpop.f32.mrf.mxu1 }
 0x4c9   :  { %v1166_v61 = vadd.f32 %v2619_v53, %v1109_v37 }
 0x4ca   :  { %v1157_v23 = vpop.f32.mrf.mxu1 }
 0x4cb   :  { %v1158_v13 = vadd.f32 %v1157_v23, %v1107_v20  ;;  %v1228_v41 = vadd.f32 %v3810_v4, %v1166_v61  ;;  %v1112_v20 = vmul.f32 %v3744_v47, %v3632_v33 }
 0x4cc   :  { %v2620_v42 = vpop.f32.mrf.mxu1 }
 0x4cd   :  { %v1169_v12 = vadd.f32 %v2620_v42, %v1110_v6  ;;  %v1226_v63 = vadd.f32 %v3810_v4, %v1158_v13  ;;  %v1244_v58 = vmax.f32 %v1228_v41, 0.0  ;;  %v1117_v13 = vmul.f32 %v3746_v49, %v3647_v14 }
 0x4ce   :  { %v1160_v10 = vpop.f32.mrf.mxu1  ;;  %v1115_v41 = vmul.f32 %v3748_v57, %v3643_v55  ;;  %v1118_v49 = vmul.f32 %v3750_v18, %v3651_v36  ;;  %v1116_v57 = vmul.f32 %v3752_v56, %v3660_v54 }
 0x4cf   :  { %v1229_v24 = vadd.f32 %v3810_v4, %v1169_v12  ;;  %v1161_v52 = vadd.f32 %v1160_v10, %v1108_v0  ;;  %v1242_v21 = vmax.f32 %v1226_v63, 0.0 }
 0x4d0   :  { %v2623_v3 = vpop.f32.mrf.mxu1 }
 0x4d1   :  { %v1245_v62 = vmax.f32 %v1229_v24, 0.0  ;;  %v1227_v11 = vadd.f32 %v3810_v4, %v1161_v52  ;;  %v1182_v2 = vadd.f32 %v2623_v3, %v1113_v30 }
 0x4d2   :  { %v1173_v31 = vpop.f32.mrf.mxu1 }
 0x4d3   :  { %v1243_v26 = vmax.f32 %v1227_v11, 0.0  ;;  %v1174_v50 = vadd.f32 %v1173_v31, %v1111_v48  ;;  %v1259_v37 = vpack.c.bf16 %v1245_v62, %v1244_v58  ;;  %v1232_v29 = vadd.f32 %v3810_v4, %v1182_v2 }
 0x4d4   :  { %v2624_v53 = vpop.f32.mrf.mxu1 }
 0x4d5   :  { %v1258_v61 = vpack.c.bf16 %v1243_v26, %v1242_v21  ;;  %v1185_v23 = vadd.f32 %v2624_v53, %v1114_v15  ;;  %v1230_v42 = vadd.f32 %v3810_v4, %v1174_v50  ;;  %v1248_v47 = vmax.f32 %v1232_v29, 0.0 }
 0x4d6   :  { %v1176_v6 = vpop.f32.mrf.mxu1  ;;  %v1121_v21 = vmul.f32 %v3754_v25, %v3675_v38 }
 0x4d7   :  { %v1233_v8 = vadd.f32 %v3810_v4, %v1185_v23  ;;  %v1177_v0 = vadd.f32 %v1176_v6, %v1112_v20  ;;  %1396 = vmatmul.mubr.bf16.vlgmr.msra.gmra.mxu0 %v1258_v61  ;;  %v1246_v52 = vmax.f32 %v1230_v42, 0.0  ;;  %v1122_v6 = vmul.f32 %v3758_v17, %v3679_v46 }
 0x4d8   :  { %v2627_v12 = vpop.f32.mrf.mxu1  ;;  %1405 = vmatprep.mubr.bf16.mxu0 %v4310_v39 }
 0x4d9   :  { %v1249_v10 = vmax.f32 %v1233_v8, 0.0  ;;  %v1231_v30 = vadd.f32 %v3810_v4, %v1177_v0  ;;  %v1198_v63 = vadd.f32 %v2627_v12, %v1117_v13 }
 0x4da   :  { %v1189_v24 = vpop.f32.mrf.mxu1 }
 0x4db   :  { %v1247_v48 = vmax.f32 %v1231_v30, 0.0  ;;  %v1190_v3 = vadd.f32 %v1189_v24, %v1115_v41  ;;  %v1261_v58 = vpack.c.bf16 %v1249_v10, %v1248_v47  ;;  %v1236_v11 = vadd.f32 %v3810_v4, %v1198_v63 }
 0x4dc   :  { %v2628_v62 = vpop.f32.mrf.mxu1  ;;  %v1120_v63 = vmul.f32 %v3762_v1, %v3688_v60 }
 0x4dd   :  { %v1201_v2 = vadd.f32 %v2628_v62, %v1118_v49  ;;  %v1260_v15 = vpack.c.bf16 %v1247_v48, %v1246_v52  ;;  %v1234_v26 = vadd.f32 %v3810_v4, %v1190_v3  ;;  %v1252_v20 = vmax.f32 %v1236_v11, 0.0 }
 0x4de   :  { %v1192_v31 = vpop.f32.mrf.mxu1  ;;  %v1119_v49 = vmul.f32 %v3756_v43, %v3671_v35 }
 0x4df   :  { %v1237_v18 = vadd.f32 %v3810_v4, %v1201_v2  ;;  %v1193_v50 = vadd.f32 %v1192_v31, %v1116_v57  ;;  %1406 = vmatmul.mubr.bf16.gmra.mxu0 %v1259_v37  ;;  %v1250_v13 = vmax.f32 %v1234_v26, 0.0 }
 0x4e0   :  { %v2631_v53 = vpop.f32.mrf.mxu1  ;;  %1415 = vmatprep.mubr.bf16.mxu0 %v4310_v39 }
 0x4e1   :  { %v1253_v61 = vmax.f32 %v1237_v18, 0.0  ;;  %v1235_v56 = vadd.f32 %v3810_v4, %v1193_v50  ;;  %v1214_v29 = vadd.f32 %v2631_v53, %v1121_v21 }
 0x4e2   :  { %v1205_v23 = vpop.f32.mrf.mxu1 }
 0x4e3   :  { %v1251_v25 = vmax.f32 %v1235_v56, 0.0  ;;  %v1263_v42 = vpack.c.bf16 %v1253_v61, %v1252_v20  ;;  %v1240_v0 = vadd.f32 %v3810_v4, %v1214_v29  ;;  %v1206_v52 = vadd.f32 %v1205_v23, %v1119_v49 }
 0x4e4   :  { %v2632_v8 = vpop.f32.mrf.mxu1 }
 0x4e5   :  { %v1217_v41 = vadd.f32 %v2632_v8, %v1122_v6  ;;  %v1262_v37 = vpack.c.bf16 %v1251_v25, %v1250_v13  ;;  %v1256_v47 = vmax.f32 %v1240_v0, 0.0  ;;  %v1238_v3 = vadd.f32 %v3810_v4, %v1206_v52  ;;  %v2775_v13 = vld [vmem:[%s4302_s8 + $0x38] sm:$0xff]   ;;  %v2776_v25 = vld [vmem:[%s4302_s8 + $0x30] sm:$0xff]   ;;  %v2777_v0 = vld [vmem:[%s4302_s8 + $0x28] sm:$0xff]  }
 0x4e6   :  { %v1208_v17 = vpop.f32.mrf.mxu1  ;;  %2633 = vmatprep.subr.bf16.mxu0 %v2775_v13 }
 0x4e7   :  { %v1241_v12 = vadd.f32 %v3810_v4, %v1217_v41  ;;  %1416 = vmatmul.mubr.bf16.gmra.mxu0 %v1260_v15  ;;  %v1209_v24 = vadd.f32 %v1208_v17, %v1120_v63  ;;  %v1254_v62 = vmax.f32 %v1238_v3, 0.0 }
 0x4e8   :  { %1425 = vmatprep.mubr.bf16.mxu0 %v4310_v39  ;;  %2634 = vmatpush3.bf16.msra.mxu0 %v2775_v13 }
 0x4e9   :  { %v1257_v10 = vmax.f32 %v1241_v12, 0.0  ;;  %v1239_v48 = vadd.f32 %v3810_v4, %v1209_v24  ;;  %2635 = vmatprep.subr.bf16.mxu0 %v2776_v25 }
 0x4eb   :  { %v1265_v30 = vpack.c.bf16 %v1257_v10, %v1256_v47 }
 0x4ec   :  { %2636 = vmatpush3.bf16.msra.mxu0 %v2776_v25 }
 0x4ed   :  { %2637 = vmatprep.subr.bf16.mxu0 %v2777_v0 }
 0x4ef   :  { %1426 = vmatmul.mubr.bf16.gmra.mxu0 %v1261_v58  ;;  %v1255_v58 = vmax.f32 %v1239_v48, 0.0 }
 0x4f0   :  { %1435 = vmatprep.mubr.bf16.mxu0 %v4310_v39  ;;  %2638 = vmatpush3.bf16.msra.mxu0 %v2777_v0 }
 0x4f1   :  { %v1264_v57 = vpack.c.bf16 %v1255_v58, %v1254_v62 }
 0x4f7   :  { %1436 = vmatmul.mubr.bf16.gmra.mxu0 %v1262_v37 }
 0x4f8   :  { %1445 = vmatprep.mubr.bf16.mxu0 %v4310_v39 }
 0x4ff   :  { %1446 = vmatmul.mubr.bf16.gmra.mxu0 %v1263_v42 }
 0x500   :  { %1455 = vmatprep.mubr.bf16.mxu0 %v4310_v39 }
 0x507   :  { %1456 = vmatmul.mubr.bf16.gmra.mxu0 %v1264_v57 }
 0x508   :  { %1465 = vmatprep.mubr.bf16.mxu0 %v4310_v39 }
 0x50f   :  { %1466 = vmatmul.mubr.bf16.gmra.mxu0 %v1265_v30 }
 0x597   :  { %v3863_v1 = vpop.f32.mrf.mxu0 }
 0x599   :  { %v3865_v11 = vpop.f32.mrf.mxu0 }
 0x59b   :  { %v3867_v43 = vpop.f32.mrf.mxu0 }
 0x59d   :  { %v3871_v4 = vpop.f32.mrf.mxu0 }
 0x59f   :  { %v3875_v31 = vpop.f32.mrf.mxu0 }
 0x5a1   :  { %v3877_v21 = vpop.f32.mrf.mxu0 }
 0x5a3   :  { %v3879_v26 = vpop.f32.mrf.mxu0 }
 0x5a4   :  { %v1478_v18 = vpack.c.bf16 %v3879_v26, %v3875_v31 }
 0x5a5   :  { %v3883_v50 = vpop.f32.mrf.mxu0 }
 0x5a6   :  { %v1479_v53 = vpack.c.bf16 %v3883_v50, %v3877_v21 }
 0x5a7   :  { %v3887_v20 = vpop.f32.mrf.mxu0 }
 0x5a9   :  { %v3889_v61 = vpop.f32.mrf.mxu0 }
 0x5ab   :  { %v3891_v56 = vpop.f32.mrf.mxu0 }
 0x5ad   :  { %v3893_v29 = vpop.f32.mrf.mxu0 }
 0x5af   :  { %v3895_v23 = vpop.f32.mrf.mxu0 }
 0x5b1   :  { %v3897_v6 = vpop.f32.mrf.mxu0 }
 0x5b3   :  { %v3905_v42 = vpop.f32.mrf.mxu0 }
 0x5b5   :  { %v3907_v8 = vpop.f32.mrf.mxu0 }
 0x5b7   :  { %v3912_v41 = vpop.f32.mrf.mxu0 }
 0x5b9   :  { %v3914_v37 = vpop.f32.mrf.mxu0 }
 0x5bb   :  { %v3916_v12 = vpop.f32.mrf.mxu0 }
 0x5bd   :  { %v3918_v47 = vpop.f32.mrf.mxu0 }
 0x5bf   :  { %v3920_v10 = vpop.f32.mrf.mxu0 }
 0x5c1   :  { %v3922_v30 = vpop.f32.mrf.mxu0 }
 0x5c3   :  { %v3924_v17 = vpop.f32.mrf.mxu0 }
 0x5c4   :  { %v1486_v15 = vpack.c.bf16 %v3924_v17, %v3920_v10 }
 0x5c5   :  { %v3926_v63 = vpop.f32.mrf.mxu0 }
 0x5c6   :  { %v1487_v2 = vpack.c.bf16 %v3926_v63, %v3922_v30 }
 0x5c7   :  { %v3928_v49 = vpop.f32.mrf.mxu0 }
 0x5c9   :  { %v3930_v24 = vpop.f32.mrf.mxu0 }
 0x5cb   :  { %v3932_v52 = vpop.f32.mrf.mxu0 }
 0x5cc   :  { %v1488_v39 = vpack.c.bf16 %v3932_v52, %v3928_v49 }
 0x5cd   :  { %v3934_v48 = vpop.f32.mrf.mxu0 }
 0x5ce   :  { %v1489_v0 = vpack.c.bf16 %v3934_v48, %v3930_v24 }
 0x5cf   :  { %v3936_v3 = vpop.f32.mrf.mxu0 }
 0x5d1   :  { %v3938_v58 = vpop.f32.mrf.mxu0 }
 0x5d3   :  { %v3940_v62 = vpop.f32.mrf.mxu0 }
 0x5d4   :  { %v1490_v25 = vpack.c.bf16 %v3940_v62, %v3936_v3 }
 0x5d5   :  { %v3942_v57 = vpop.f32.mrf.mxu0 }
 0x5d6   :  { %4333 = vst [vmem:[#allocation7_spill] sm:$0xff] %v3942_v57  ;;  %v1491_v13 = vpack.c.bf16 %v3942_v57, %v3938_v58  ;;  %v1485_v57 = vpack.c.bf16 %v3918_v47, %v3914_v37 }
 0x5d8   :  { %1524 = vmatprep.subr.bf16.mxu1 %v1491_v13  ;;  %v1484_v13 = vpack.c.bf16 %v3916_v12, %v3912_v41 }
 0x5d9   :  { %1525 = vmatpush1.bf16.msra.mxu1 %v1490_v25  ;;  %v1483_v25 = vpack.c.bf16 %v3907_v8, %v3897_v6 }
 0x5da   :  { %1526 = vmatprep.subr.bf16.mxu1 %v1489_v0  ;;  %v4335_v0 = vpack.c.bf16 %v3867_v43, %v3863_v1 }
 0x5dd   :  { %1527 = vmatpush1.bf16.msra.mxu1 %v1488_v39  ;;  %v1482_v39 = vpack.c.bf16 %v3905_v42, %v3895_v23 }
 0x5de   :  { %1528 = vmatprep.subr.bf16.mxu1 %v1487_v2  ;;  %v1481_v2 = vpack.c.bf16 %v3893_v29, %v3889_v61 }
 0x5e1   :  { %1529 = vmatpush1.bf16.msra.mxu1 %v1486_v15  ;;  %v1480_v15 = vpack.c.bf16 %v3891_v56, %v3887_v20 }
 0x5e2   :  { %1530 = vmatprep.subr.bf16.mxu1 %v1485_v57  ;;  %v4334_v57 = vpack.c.bf16 %v3871_v4, %v3865_v11 }
 0x5e5   :  { %1531 = vmatpush1.bf16.msra.mxu1 %v1484_v13  ;;  %v4336_v13 = vmov 0  }
 0x5e6   :  { %1532 = vmatprep.subr.bf16.mxu1 %v1483_v25  ;;  %v2780_v25 = vld [vmem:[%s4302_s8 + $0x10] sm:$0xff]  }
 0x5e9   :  { %1533 = vmatpush1.bf16.msra.mxu1 %v1482_v39  ;;  %v2782_v39 = vld [vmem:[%s4302_s8] sm:$0xff]  }
 0x5ea   :  { %1534 = vmatprep.subr.bf16.mxu1 %v1481_v2  ;;  %v4337_v2 = vld [vmem:[#allocation5_spill] sm:$0xff] }
 0x5ed   :  { %1535 = vmatpush1.bf16.msra.mxu1 %v1480_v15  ;;  %v1644_v15 = vsub.s32 1, %v4337_v2  ;;  %v1494_v2 = vmul.f32 %v3867_v43, %v3600_v51  ;;  %v1497_v43 = vmul.f32 %v3877_v21, %v3590_v22 }
 0x5ee   :  { %1536 = vmatprep.subr.bf16.mxu1 %v1479_v53  ;;  %v2779_v53 = vld [vmem:[%s4302_s8 + $0x18] sm:$0xff]  }
 0x5f1   :  { %1537 = vmatpush1.bf16.msra.mxu1 %v1478_v18  ;;  %v2778_v18 = vld [vmem:[%s4302_s8 + $0x20] sm:$0xff]  }
 0x5f2   :  { %1538 = vmatprep.subr.bf16.mxu1 %v4334_v57  ;;  %2639 = vmatprep.subr.bf16.mxu0 %v2778_v18  ;;  %v1282_v57 = vld [vmem:[%s4301_s7] sm:$0x3]  ;;  %s2840_s7 = smov [#allocation2]  }
 0x5f3   :  { %2640 = vmatpush3.bf16.msra.mxu0 %v2778_v18  ;;  %v4338_v18 = vld [vmem:[#allocation6_spill] sm:$0xff] }
 0x5f4   :  { %2641 = vmatprep.subr.bf16.mxu0 %v2779_v53 }
 0x5f5   :  { %1539 = vmatpush1.bf16.msra.mxu1 %v4335_v0  ;;  %v1492_v0 = vmul.f32 %v3863_v1, %v3586_v9 }
 0x5f7   :  { %2642 = vmatpush3.bf16.msra.mxu0 %v2779_v53  ;;  %v4012_v53 = vrot.slane %v1282_v57, %v4338_v18 }
 0x5f8   :  { %1557 = vmatmul.mubr.bf16.vlgmr.msra.gmra.mxu1 %v3538_v7  ;;  %2643 = vmatprep.subr.bf16.mxu0 %v2780_v25 }
 0x5f9   :  { %1566 = vmatprep.mubr.bf16.mxu1 %v4336_v13 }
 0x5fb   :  { %2644 = vmatpush3.bf16.msra.mxu0 %v2780_v25  ;;  %v4014_v25 = vrot.slane %v1282_v57, %v1644_v15  ;;  %v1496_v57 = vmul.f32 %v3875_v31, %v3590_v22 }
 0x600   :  { %1567 = vmatmul.mubr.bf16.gmra.mxu1 %v3540_v59 }
 0x601   :  { %1576 = vmatprep.mubr.bf16.mxu1 %v4336_v13 }
 0x608   :  { %1577 = vmatmul.mubr.bf16.gmra.mxu1 %v3542_v28 }
 0x609   :  { %1586 = vmatprep.mubr.bf16.mxu1 %v4336_v13 }
 0x610   :  { %1587 = vmatmul.mubr.bf16.gmra.mxu1 %v3544_v19 }
 0x611   :  { %1596 = vmatprep.mubr.bf16.mxu1 %v4336_v13 }
 0x618   :  { %1597 = vmatmul.mubr.bf16.gmra.mxu1 %v3550_v32  ;;  %v1495_v32 = vmul.f32 %v3871_v4, %v3600_v51 }
 0x619   :  { %1606 = vmatprep.mubr.bf16.mxu1 %v4336_v13 }
 0x620   :  { %1607 = vmatmul.mubr.bf16.gmra.mxu1 %v3553_v45 }
 0x621   :  { %1616 = vmatprep.mubr.bf16.mxu1 %v4336_v13 }
 0x628   :  { %1617 = vmatmul.mubr.bf16.gmra.mxu1 %v3556_v27 }
 0x629   :  { %1626 = vmatprep.mubr.bf16.mxu1 %v4336_v13 }
 0x630   :  { %1627 = vmatmul.mubr.bf16.gmra.mxu1 %v3559_v34 }
 0x631   :  { %2681 = vmatprep.mubr.bf16.mxu1 %v3538_v7  ;;  %v2781_v7 = vld [vmem:[%s4302_s8 + $0x8] sm:$0xff]   ;;  %s2183_s8 = sshll.u32 %s2840_s7, 4  ;;  %s2184_s8 = int_to_ptr.vmem [resolvable:$true] %s2183_s8 }
 0x632   :  { %2645 = vmatprep.subr.bf16.mxu0 %v2781_v7  ;;  %s2815_s12 = scalar_lea.vmem %s2184_s8, 2048  ;;  %p2820_p1 = scmp.lt.s32.totalorder %s2184_s8, %s2184_s8 }
 0x633   :  { %2646 = vmatpush3.bf16.msra.mxu0 %v2781_v7  ;;  %v1493_v7 = vmul.f32 %v3865_v11, %v3586_v9  ;;  %p2816_p0 = scmp.ne.s32.totalorder %s2184_s8, %s2815_s12  ;;  %p2821_p2 = scmp.lt.s32.totalorder %s2815_s12, %s2815_s12 }
 0x634   :  { %2647 = vmatprep.subr.bf16.mxu0 %v2782_v39 }
 0x635   :  { %p2822_p3 = por %p2821_p2, %p2820_p1 }
 0x637   :  { %2648 = vmatpush3.bf16.msra.mxu0 %v2782_v39  ;;  %p2823_p4 = pnand %p2822_p3, %p2816_p0 }
 0x6b8   :  { %v1558_v13 = vpop.f32.mrf.mxu1 }
 0x6b9   :  { %v1559_v34 = vadd.f32 %v1558_v13, %v1492_v0 }
 0x6ba   :  { %v1560_v39 = vpop.f32.mrf.mxu1 }
 0x6bb   :  { %v1561_v27 = vadd.f32 %v1560_v39, %v1493_v7  ;;  %v1648_v1 = vadd.f32 %v4012_v53, %v1559_v34 }
 0x6bc   :  { %v1562_v45 = vpop.f32.mrf.mxu1 }
 0x6bd   :  { %v1649_v18 = vadd.f32 %v4014_v25, %v1561_v27  ;;  %v1563_v19 = vadd.f32 %v1562_v45, %v1494_v2  ;;  %v1680_v7 = vmax.f32 %v1648_v1, 0.0  ;;  %v1498_v27 = vmul.f32 %v3879_v26, %v3594_v16 }
 0x6be   :  { %v1564_v15 = vpop.f32.mrf.mxu1  ;;  %v1500_v26 = vmul.f32 %v3887_v20, %v3610_v44 }
 0x6bf   :  { %v1650_v11 = vadd.f32 %v4012_v53, %v1563_v19  ;;  %v1565_v0 = vadd.f32 %v1564_v15, %v1495_v32  ;;  %v1681_v34 = vmax.f32 %v1649_v18, 0.0  ;;  %v1499_v19 = vmul.f32 %v3883_v50, %v3594_v16 }
 0x6c0   :  { %v1568_v13 = vpop.f32.mrf.mxu1 }
 0x6c1   :  { %v1682_v39 = vmax.f32 %v1650_v11, 0.0  ;;  %v1651_v4 = vadd.f32 %v4014_v25, %v1565_v0  ;;  %v1569_v51 = vadd.f32 %v1568_v13, %v1496_v57 }
 0x6c2   :  { %v1570_v45 = vpop.f32.mrf.mxu1 }
 0x6c3   :  { %v1683_v2 = vmax.f32 %v1651_v4, 0.0  ;;  %v1571_v9 = vadd.f32 %v1570_v45, %v1497_v43  ;;  %v1712_v31 = vpack.c.bf16 %v1682_v39, %v1680_v7  ;;  %v1652_v21 = vadd.f32 %v4012_v53, %v1569_v51 }
 0x6c4   :  { %v1572_v32 = vpop.f32.mrf.mxu1  ;;  %v1501_v43 = vmul.f32 %v3889_v61, %v3610_v44  ;;  %v1502_v39 = vmul.f32 %v3891_v56, %v3632_v33  ;;  %v1504_v56 = vmul.f32 %v3895_v23, %v3619_v5 }
 0x6c5   :  { %v1653_v1 = vadd.f32 %v4014_v25, %v1571_v9  ;;  %v1573_v15 = vadd.f32 %v1572_v32, %v1498_v27  ;;  %2649 = vmatprep.mubr.bf16.mxu0 %v1712_v31  ;;  %v4036_v11 = vpack.c.bf16 %v1683_v2, %v1681_v34  ;;  %v1684_v13 = vmax.f32 %v1652_v21, 0.0 }
 0x6c6   :  { %v1574_v57 = vpop.f32.mrf.mxu1  ;;  %v1503_v2 = vmul.f32 %v3893_v29, %v3632_v33 }
 0x6c7   :  { %v1654_v18 = vadd.f32 %v4012_v53, %v1573_v15  ;;  %v1575_v0 = vadd.f32 %v1574_v57, %v1499_v19  ;;  %v1685_v27 = vmax.f32 %v1653_v1, 0.0 }
 0x6c8   :  { %v1578_v50 = vpop.f32.mrf.mxu1 }
 0x6c9   :  { %v1686_v7 = vmax.f32 %v1654_v18, 0.0  ;;  %v1655_v51 = vadd.f32 %v4014_v25, %v1575_v0  ;;  %v1579_v9 = vadd.f32 %v1578_v50, %v1500_v26  ;;  %v1505_v26 = vmul.f32 %v3897_v6, %v3619_v5 }
 0x6ca   :  { %v1580_v4 = vpop.f32.mrf.mxu1 }
 0x6cb   :  { %v1713_v45 = vpack.c.bf16 %v1686_v7, %v1684_v13  ;;  %v1687_v34 = vmax.f32 %v1655_v51, 0.0  ;;  %v1581_v20 = vadd.f32 %v1580_v4, %v1501_v43  ;;  %v1656_v61 = vadd.f32 %v4012_v53, %v1579_v9 }
 0x6cc   :  { %v1582_v31 = vpop.f32.mrf.mxu1  ;;  %v1506_v13 = vmul.f32 %v3905_v42, %v3623_v40  ;;  %v1507_v4 = vmul.f32 %v3907_v8, %v3623_v40  ;;  %v1508_v42 = vmul.f32 %v3912_v41, %v3643_v55 }
 0x6cd   :  { %v1657_v19 = vadd.f32 %v4014_v25, %v1581_v20  ;;  %v1583_v32 = vadd.f32 %v1582_v31, %v1502_v39  ;;  %2650 = vmatmul.mubr.bf16.vlgmr.msra.gmra.mxu0 %v1713_v45  ;;  %v4050_v21 = vpack.c.bf16 %v1687_v34, %v1685_v27  ;;  %v1688_v18 = vmax.f32 %v1656_v61, 0.0 }
 0x6ce   :  { %v1584_v15 = vpop.f32.mrf.mxu1 }
 0x6cf   :  { %v1658_v1 = vadd.f32 %v4012_v53, %v1583_v32  ;;  %v1585_v57 = vadd.f32 %v1584_v15, %v1503_v2  ;;  %v1689_v51 = vmax.f32 %v1657_v19, 0.0  ;;  %v1509_v19 = vmul.f32 %v3914_v37, %v3643_v55 }
 0x6d0   :  { %v1588_v29 = vpop.f32.mrf.mxu1 }
 0x6d1   :  { %v1690_v0 = vmax.f32 %v1658_v1, 0.0  ;;  %v1659_v43 = vadd.f32 %v4014_v25, %v1585_v57  ;;  %v1589_v50 = vadd.f32 %v1588_v29, %v1504_v56  ;;  %v1510_v57 = vmul.f32 %v3916_v12, %v3660_v54 }
 0x6d2   :  { %v1590_v7 = vpop.f32.mrf.mxu1  ;;  %v1512_v12 = vmul.f32 %v3920_v10, %v3647_v14 }
 0x6d3   :  { %v1691_v9 = vmax.f32 %v1659_v43, 0.0  ;;  %v1591_v39 = vadd.f32 %v1590_v7, %v1505_v26  ;;  %v1714_v23 = vpack.c.bf16 %v1690_v0, %v1688_v18  ;;  %v1660_v6 = vadd.f32 %v4012_v53, %v1589_v50 }
 0x6d4   :  { %v1592_v27 = vpop.f32.mrf.mxu1  ;;  %v1511_v43 = vmul.f32 %v3918_v47, %v3660_v54 }
 0x6d5   :  { %v1661_v45 = vadd.f32 %v4014_v25, %v1591_v39  ;;  %v1593_v34 = vadd.f32 %v1592_v27, %v1506_v13  ;;  %2653 = vmatprep.mubr.bf16.mxu0 %v1714_v23  ;;  %v4064_v20 = vpack.c.bf16 %v1691_v9, %v1689_v51  ;;  %v1692_v32 = vmax.f32 %v1660_v6, 0.0 }
 0x6d6   :  { %v1594_v2 = vpop.f32.mrf.mxu1 }
 0x6d7   :  { %v1662_v31 = vadd.f32 %v4012_v53, %v1593_v34  ;;  %v1595_v61 = vadd.f32 %v1594_v2, %v1507_v4  ;;  %v1693_v29 = vmax.f32 %v1661_v45, 0.0  ;;  %v1513_v4 = vmul.f32 %v3922_v30, %v3647_v14 }
 0x6d8   :  { %v1598_v8 = vpop.f32.mrf.mxu1  ;;  %v1514_v2 = vmul.f32 %v3924_v17, %v3651_v36  ;;  %v1516_v17 = vmul.f32 %v3928_v49, %v3671_v35 }
 0x6d9   :  { %v1694_v15 = vmax.f32 %v1662_v31, 0.0  ;;  %v1663_v56 = vadd.f32 %v4014_v25, %v1595_v61  ;;  %v1599_v1 = vadd.f32 %v1598_v8, %v1508_v42  ;;  %v1515_v8 = vmul.f32 %v3926_v63, %v3651_v36 }
 0x6da   :  { %v1600_v26 = vpop.f32.mrf.mxu1 }
 0x6db   :  { %v1695_v18 = vmax.f32 %v1663_v56, 0.0  ;;  %v1601_v0 = vadd.f32 %v1600_v26, %v1509_v19  ;;  %v1715_v41 = vpack.c.bf16 %v1694_v15, %v1692_v32  ;;  %v1664_v37 = vadd.f32 %v4012_v53, %v1599_v1 }
 0x6dc   :  { %v1602_v50 = vpop.f32.mrf.mxu1 }
 0x6dd   :  { %v1665_v13 = vadd.f32 %v4014_v25, %v1601_v0  ;;  %v1603_v7 = vadd.f32 %v1602_v50, %v1510_v57  ;;  %2654 = vmatmul.mubr.bf16.gmra.mxu0 %v1715_v41  ;;  %v4078_v51 = vpack.c.bf16 %v1695_v18, %v1693_v29  ;;  %v1696_v27 = vmax.f32 %v1664_v37, 0.0 }
 0x6de   :  { %v1604_v9 = vpop.f32.mrf.mxu1  ;;  %v1517_v18 = vmul.f32 %v3930_v24, %v3671_v35  ;;  %v1518_v37 = vmul.f32 %v3932_v52, %v3688_v60  ;;  %v1520_v52 = vmul.f32 %v3936_v3, %v3675_v38 }
 0x6df   :  { %v1666_v39 = vadd.f32 %v4012_v53, %v1603_v7  ;;  %v1605_v23 = vadd.f32 %v1604_v9, %v1511_v43  ;;  %v1697_v31 = vmax.f32 %v1665_v13, 0.0 }
 0x6e0   :  { %v1608_v47 = vpop.f32.mrf.mxu1 }
 0x6e1   :  { %v1698_v6 = vmax.f32 %v1666_v39, 0.0  ;;  %v1667_v45 = vadd.f32 %v4014_v25, %v1605_v23  ;;  %v1609_v34 = vadd.f32 %v1608_v47, %v1512_v12  ;;  %v1519_v39 = vmul.f32 %v3934_v48, %v3688_v60 }
 0x6e2   :  { %v1610_v42 = vpop.f32.mrf.mxu1 }
 0x6e3   :  { %v1699_v61 = vmax.f32 %v1667_v45, 0.0  ;;  %v1611_v19 = vadd.f32 %v1610_v42, %v1513_v4  ;;  %v1716_v10 = vpack.c.bf16 %v1698_v6, %v1696_v27  ;;  %v1668_v30 = vadd.f32 %v4012_v53, %v1609_v34 }
 0x6e4   :  { %v1612_v32 = vpop.f32.mrf.mxu1 }
 0x6e5   :  { %v1669_v15 = vadd.f32 %v4014_v25, %v1611_v19  ;;  %v1613_v56 = vadd.f32 %v1612_v32, %v1514_v2  ;;  %2657 = vmatprep.mubr.bf16.mxu0 %v1716_v10  ;;  %v4092_v1 = vpack.c.bf16 %v1699_v61, %v1697_v31  ;;  %v1700_v0 = vmax.f32 %v1668_v30, 0.0 }
 0x6e6   :  { %v1614_v57 = vpop.f32.mrf.mxu1  ;;  %v1521_v2 = vmul.f32 %v3938_v58, %v3675_v38  ;;  %v1522_v10 = vmul.f32 %v3940_v62, %v3679_v46 }
 0x6e7   :  { %v1670_v26 = vadd.f32 %v4012_v53, %v1613_v56  ;;  %v1615_v29 = vadd.f32 %v1614_v57, %v1515_v8  ;;  %v1701_v7 = vmax.f32 %v1669_v15, 0.0  ;;  %v4339_v56 = vld [vmem:[#allocation7_spill] sm:$0xff] }
 0x6e8   :  { %v1618_v63 = vpop.f32.mrf.mxu1  ;;  %v1523_v57 = vmul.f32 %v4339_v56, %v3679_v46 }
 0x6e9   :  { %v1702_v41 = vmax.f32 %v1670_v26, 0.0  ;;  %v1671_v43 = vadd.f32 %v4014_v25, %v1615_v29  ;;  %v1619_v50 = vadd.f32 %v1618_v63, %v1516_v17 }
 0x6ea   :  { %v1620_v13 = vpop.f32.mrf.mxu1 }
 0x6eb   :  { %v1703_v9 = vmax.f32 %v1671_v43, 0.0  ;;  %v1621_v12 = vadd.f32 %v1620_v13, %v1517_v18  ;;  %v1717_v49 = vpack.c.bf16 %v1702_v41, %v1700_v0  ;;  %v1672_v24 = vadd.f32 %v4012_v53, %v1619_v50 }
 0x6ec   :  { %v1622_v23 = vpop.f32.mrf.mxu1 }
 0x6ed   :  { %v1673_v4 = vadd.f32 %v4014_v25, %v1621_v12  ;;  %v1623_v47 = vadd.f32 %v1622_v23, %v1518_v37  ;;  %2658 = vmatmul.mubr.bf16.gmra.mxu0 %v1717_v49  ;;  %v2046_v27 = vpack.c.bf16 %v1703_v9, %v1701_v7  ;;  %v1704_v48 = vmax.f32 %v1672_v24, 0.0 }
 0x6ee   :  { %v1624_v6 = vpop.f32.mrf.mxu1 }
 0x6ef   :  { %v1674_v45 = vadd.f32 %v4012_v53, %v1623_v47  ;;  %v1625_v34 = vadd.f32 %v1624_v6, %v1519_v39  ;;  %v1705_v32 = vmax.f32 %v1673_v4, 0.0 }
 0x6f0   :  { %v1628_v42 = vpop.f32.mrf.mxu1 }
 0x6f1   :  { %v1706_v31 = vmax.f32 %v1674_v45, 0.0  ;;  %v1675_v61 = vadd.f32 %v4014_v25, %v1625_v34  ;;  %v1629_v19 = vadd.f32 %v1628_v42, %v1520_v52 }
 0x6f2   :  { %v1630_v8 = vpop.f32.mrf.mxu1 }
 0x6f3   :  { %v1707_v30 = vmax.f32 %v1675_v61, 0.0  ;;  %v1631_v15 = vadd.f32 %v1630_v8, %v1521_v2  ;;  %v1718_v3 = vpack.c.bf16 %v1706_v31, %v1704_v48  ;;  %v1676_v58 = vadd.f32 %v4012_v53, %v1629_v19  ;;  %v4340_v19 = vld [vmem:[#allocation9_spill] sm:$0xff]  ;;  %v4342_v8 = vld [vmem:[#allocation11_spill] sm:$0xff] }
 0x6f4   :  { %v1632_v17 = vpop.f32.mrf.mxu1 }
 0x6f5   :  { %v1677_v26 = vadd.f32 %v4014_v25, %v1631_v15  ;;  %v1633_v29 = vadd.f32 %v1632_v17, %v1522_v10  ;;  %2661 = vmatprep.mubr.bf16.mxu0 %v1718_v3  ;;  %v2047_v18 = vpack.c.bf16 %v1707_v30, %v1705_v32  ;;  %v1708_v41 = vmax.f32 %v1676_v58, 0.0  ;;  %v4341_v10 = vld [vmem:[#allocation10_spill] sm:$0xff]  ;;  %v4343_v32 = vld [vmem:[#allocation12_spill] sm:$0xff]  ;;  %v4344_v30 = vld [vmem:[#allocation13_spill] sm:$0xff] }
 0x6f6   :  { %v1634_v63 = vpop.f32.mrf.mxu1 }
 0x6f7   :  { %v1678_v0 = vadd.f32 %v4012_v53, %v1633_v29  ;;  %v1635_v62 = vadd.f32 %v1634_v63, %v1523_v57  ;;  %v1709_v37 = vmax.f32 %v1677_v26, 0.0 }
 0x6f9   :  { %v1710_v43 = vmax.f32 %v1678_v0, 0.0  ;;  %v1679_v50 = vadd.f32 %v4014_v25, %v1635_v62 }
 0x6fb   :  { %v1711_v13 = vmax.f32 %v1679_v50, 0.0  ;;  %v1719_v7 = vpack.c.bf16 %v1710_v43, %v1708_v41 }
 0x6fd   :  { %2662 = vmatmul.mubr.bf16.gmra.mxu0 %v1719_v7  ;;  %v2048_v9 = vpack.c.bf16 %v1711_v13, %v1709_v37 }
 0x6fe   :  { %2713 = vmatprep.mubr.bf16.mxu0 %v4036_v11 }
 0x6ff   :  { %2697 = vmatprep.subr.bf16.mxu0 %v2048_v9 }
 0x700   :  { %2698 = vmatpush3.bf16.xpose.msra.mxu0 %v2048_v9 }
 0x701   :  { %2699 = vmatprep.subr.bf16.mxu0 %v2047_v18 }
 0x708   :  { %2700 = vmatpush3.bf16.xpose.msra.mxu0 %v2047_v18 }
 0x709   :  { %2701 = vmatprep.subr.bf16.mxu0 %v2046_v27 }
 0x710   :  { %2702 = vmatpush3.bf16.xpose.msra.mxu0 %v2046_v27 }
 0x711   :  { %2703 = vmatprep.subr.bf16.mxu0 %v4092_v1 }
 0x718   :  { %2704 = vmatpush3.bf16.xpose.msra.mxu0 %v4092_v1 }
 0x719   :  { %2705 = vmatprep.subr.bf16.mxu0 %v4078_v51 }
 0x720   :  { %2706 = vmatpush3.bf16.xpose.msra.mxu0 %v4078_v51 }
 0x721   :  { %2707 = vmatprep.subr.bf16.mxu0 %v4064_v20 }
 0x728   :  { %2708 = vmatpush3.bf16.xpose.msra.mxu0 %v4064_v20 }
 0x729   :  { %2709 = vmatprep.subr.bf16.mxu0 %v4050_v21 }
 0x730   :  { %2710 = vmatpush3.bf16.xpose.msra.mxu0 %v4050_v21 }
 0x731   :  { %2711 = vmatprep.subr.bf16.mxu0 %v4036_v11 }
 0x738   :  { %2712 = vmatpush3.bf16.xpose.msra.mxu0 %v4036_v11 }
 0x73f   :  { %2714 = vmatmul.mubr.bf16.vlgmr.msra.gmra.mxu0 %v4050_v21 }
 0x740   :  { %2717 = vmatprep.mubr.bf16.mxu0 %v4064_v20 }
 0x747   :  { %2718 = vmatmul.mubr.bf16.gmra.mxu0 %v4078_v51 }
 0x748   :  { %2721 = vmatprep.mubr.bf16.mxu0 %v4092_v1 }
 0x74f   :  { %2722 = vmatmul.mubr.bf16.gmra.mxu0 %v2046_v27 }
 0x750   :  { %2725 = vmatprep.mubr.bf16.mxu0 %v2047_v18 }
 0x757   :  { %2726 = vmatmul.mubr.bf16.gmra.mxu0 %v2048_v9 }
 0x78d   :  { %v4135_v53 = vpop.f32.mrf.mxu0 }
 0x78f   :  { %v4137_v25 = vpop.f32.mrf.mxu0 }
 0x791   :  { %v4139_v12 = vpop.f32.mrf.mxu0 }
 0x792   :  { %v1883_v31 = vpack.c.bf16 %v4139_v12, %v4135_v53 }
 0x793   :  { %v4141_v49 = vpop.f32.mrf.mxu0 }
 0x794   :  { %v1882_v61 = vpack.c.bf16 %v4141_v49, %v4137_v25 }
 0x79d   :  { %v4143_v11 = vpop.f32.mrf.mxu0 }
 0x79f   :  { %v4145_v21 = vpop.f32.mrf.mxu0 }
 0x7a1   :  { %v4147_v20 = vpop.f32.mrf.mxu0 }
 0x7a2   :  { %v1885_v42 = vpack.c.bf16 %v4147_v20, %v4143_v11 }
 0x7a3   :  { %v4149_v51 = vpop.f32.mrf.mxu0 }
 0x7a4   :  { %v1884_v48 = vpack.c.bf16 %v4149_v51, %v4145_v21 }
 0x7ad   :  { %v4151_v1 = vpop.f32.mrf.mxu0 }
 0x7af   :  { %v4153_v39 = vpop.f32.mrf.mxu0 }
 0x7b1   :  { %v4155_v23 = vpop.f32.mrf.mxu0 }
 0x7b2   :  { %v1887_v34 = vpack.c.bf16 %v4155_v23, %v4151_v1 }
 0x7b3   :  { %v4157_v24 = vpop.f32.mrf.mxu0 }
 0x7b4   :  { %v1886_v2 = vpack.c.bf16 %v4157_v24, %v4153_v39 }
 0x7bd   :  { %v4159_v4 = vpop.f32.mrf.mxu0 }
 0x7bf   :  { %v4161_v47 = vpop.f32.mrf.mxu0 }
 0x7c1   :  { %v4163_v27 = vpop.f32.mrf.mxu0 }
 0x7c2   :  { %v1889_v6 = vpack.c.bf16 %v4163_v27, %v4159_v4 }
 0x7c3   :  { %v4167_v52 = vpop.f32.mrf.mxu0 }
 0x7c4   :  { %v1888_v45 = vpack.c.bf16 %v4167_v52, %v4161_v47  ;;  %2665 = vmatprep.subr.bf16.mxu1 %v1889_v6 }
 0x7c5   :  { %2666 = vmatpush3.bf16.msra.mxu1 %v1889_v6 }
 0x7c6   :  { %2667 = vmatprep.subr.bf16.mxu1 %v1888_v45 }
 0x7c9   :  { %2668 = vmatpush3.bf16.msra.mxu1 %v1888_v45 }
 0x7ca   :  { %2669 = vmatprep.subr.bf16.mxu1 %v1887_v34 }
 0x7cd   :  { %2670 = vmatpush3.bf16.msra.mxu1 %v1887_v34 }
 0x7ce   :  { %2671 = vmatprep.subr.bf16.mxu1 %v1886_v2 }
 0x7d1   :  { %2672 = vmatpush3.bf16.msra.mxu1 %v1886_v2 }
 0x7d2   :  { %2673 = vmatprep.subr.bf16.mxu1 %v1885_v42 }
 0x7d5   :  { %2674 = vmatpush3.bf16.msra.mxu1 %v1885_v42 }
 0x7d6   :  { %2675 = vmatprep.subr.bf16.mxu1 %v1884_v48 }
 0x7d9   :  { %2676 = vmatpush3.bf16.msra.mxu1 %v1884_v48 }
 0x7da   :  { %2677 = vmatprep.subr.bf16.mxu1 %v1883_v31 }
 0x7dd   :  { %2678 = vmatpush3.bf16.msra.mxu1 %v1883_v31 }
 0x7de   :  { %2679 = vmatprep.subr.bf16.mxu1 %v1882_v61 }
 0x7e1   :  { %2680 = vmatpush3.bf16.msra.mxu1 %v1882_v61 }
 0x7e4   :  { %2682 = vmatmul.mubr.bf16.vlgmr.msra.gmra.mxu1 %v3540_v59 }
 0x7e5   :  { %2685 = vmatprep.mubr.bf16.mxu1 %v3542_v28 }
 0x7ec   :  { %2686 = vmatmul.mubr.bf16.gmra.mxu1 %v4340_v19 }
 0x7ed   :  { %2689 = vmatprep.mubr.bf16.mxu1 %v4341_v10 }
 0x7f4   :  { %2690 = vmatmul.mubr.bf16.gmra.mxu1 %v4342_v8 }
 0x7f5   :  { %2693 = vmatprep.mubr.bf16.mxu1 %v4343_v32 }
 0x7fc   :  { %2694 = vmatmul.mubr.bf16.gmra.mxu1 %v4344_v30 }
 0x7ff   :  { %v2715_v15 = vpop.f32.mrf.mxu0 }
 0x800   :  { %2148 = vst [vmem:[#allocation2 + $0x10] sm:$0xff] %v2715_v15 }
 0x801   :  { %v2083_v3 = vpop.f32.mrf.mxu0 }
 0x802   :  { %2146 = vst [vmem:[#allocation2] sm:$0xff] %v2083_v3 }
 0x803   :  { %v2716_v56 = vpop.f32.mrf.mxu0 }
 0x804   :  { %2149 = vst [vmem:[#allocation2 + $0x18] sm:$0xff] %v2716_v56 }
 0x805   :  { %v2086_v57 = vpop.f32.mrf.mxu0 }
 0x806   :  { %2147 = vst [vmem:[#allocation2 + $0x8] sm:$0xff] %v2086_v57 }
 0x807   :  { %v2719_v59 = vpop.f32.mrf.mxu0 }
 0x808   :  { %2152 = vst [vmem:[#allocation2 + $0x30] sm:$0xff] %v2719_v59 }
 0x809   :  { %v2099_v28 = vpop.f32.mrf.mxu0 }
 0x80a   :  { %2150 = vst [vmem:[#allocation2 + $0x20] sm:$0xff] %v2099_v28 }
 0x80b   :  { %v2720_v17 = vpop.f32.mrf.mxu0 }
 0x80c   :  { %2153 = vst [vmem:[#allocation2 + $0x38] sm:$0xff] %v2720_v17 }
 0x80d   :  { %v2102_v58 = vpop.f32.mrf.mxu0 }
 0x80e   :  { %2151 = vst [vmem:[#allocation2 + $0x28] sm:$0xff] %v2102_v58 }
 0x80f   :  { %v2723_v26 = vpop.f32.mrf.mxu0 }
 0x810   :  { %2156 = vst [vmem:[#allocation2 + $0x50] sm:$0xff] %v2723_v26 }
 0x811   :  { %v2115_v29 = vpop.f32.mrf.mxu0 }
 0x812   :  { %2154 = vst [vmem:[#allocation2 + $0x40] sm:$0xff] %v2115_v29 }
 0x813   :  { %v2724_v18 = vpop.f32.mrf.mxu0 }
 0x814   :  { %2157 = vst [vmem:[#allocation2 + $0x58] sm:$0xff] %v2724_v18 }
 0x815   :  { %v2118_v63 = vpop.f32.mrf.mxu0 }
 0x816   :  { %2155 = vst [vmem:[#allocation2 + $0x48] sm:$0xff] %v2118_v63 }
 0x817   :  { %v2727_v0 = vpop.f32.mrf.mxu0 }
 0x818   :  { %2160 = vst [vmem:[#allocation2 + $0x70] sm:$0xff] %v2727_v0 }
 0x819   :  { %v2131_v62 = vpop.f32.mrf.mxu0 }
 0x81a   :  { %2158 = vst [vmem:[#allocation2 + $0x60] sm:$0xff] %v2131_v62 }
 0x81b   :  { %v2728_v41 = vpop.f32.mrf.mxu0 }
 0x81c   :  { %2161 = vst [vmem:[#allocation2 + $0x78] sm:$0xff] %v2728_v41 }
 0x81d   :  { %v2134_v43 = vpop.f32.mrf.mxu0 }
 0x81e   :  { %2159 = vst [vmem:[#allocation2 + $0x68] sm:$0xff] %v2134_v43 }
 0x81f   :  { %2826 = shalt.err (!%p2823_p4)
}
 0x820   :  { %s2841_s13 = smov 128   ;;  %s2842_s14 = smov 8   ;;  %v1892_v50 = vmul.f32 %v4135_v53, %v3590_v22  ;;  %v4198_v37 = vld [vmem:[%s4303_s9] ss:$0 sm:$0xff]  ;;  %v4345_v7 = vld [vmem:[#allocation14_spill] sm:$0xff]  ;;  %v1893_v34 = vmul.f32 %v4139_v12, %v3594_v16  ;;  %v4346_v31 = vld [vmem:[#allocation15_spill] sm:$0xff]  ;;  %v1897_v3 = vmul.f32 %v4147_v20, %v3623_v40  ;;  %v1895_v59 = vmul.f32 %v4149_v51, %v3632_v33 }
 0x821   :  { %2189 = dma.vmem_to_hbm [thread:$0]  %s2184_s8, 2048, %s4304_s10, [#allocation3], %s2841_s13, %s2841_s13, %s2842_s14   ;;  %v1890_v9 = vmul.f32 %v4137_v25, %v4345_v7  ;;  %v1891_v22 = vmul.f32 %v4141_v49, %v4346_v31  ;;  %v1896_v25 = vmul.f32 %v4143_v11, %v3619_v5  ;;  %v1894_v49 = vmul.f32 %v4145_v21, %v3610_v44 }
 0x822   :  { %v1900_v58 = vmul.f32 %v4151_v1, %v3647_v14  ;;  %v1898_v18 = vmul.f32 %v4153_v39, %v3643_v55  ;;  %v1901_v62 = vmul.f32 %v4155_v23, %v3651_v36 }
 0x8a4   :  { %v2683_v13 = vpop.f32.mrf.mxu1 }
 0x8a5   :  { %v1949_v6 = vadd.f32 %v2683_v13, %v1892_v50  ;;  %v1899_v50 = vmul.f32 %v4157_v24, %v3660_v54 }
 0x8a6   :  { %v1940_v45 = vpop.f32.mrf.mxu1 }
 0x8a7   :  { %v2011_v2 = vadd.f32 %v4198_v37, %v1949_v6  ;;  %v1941_v42 = vadd.f32 %v1940_v45, %v1890_v9  ;;  %v1904_v9 = vmul.f32 %v4159_v4, %v3675_v38 }
 0x8a8   :  { %v2684_v48 = vpop.f32.mrf.mxu1 }
 0x8a9   :  { %v2027_v53 = vmax.f32 %v2011_v2, 0.0  ;;  %v2009_v61 = vadd.f32 %v4198_v37, %v1941_v42  ;;  %v1952_v19 = vadd.f32 %v2684_v48, %v1893_v34  ;;  %v1902_v34 = vmul.f32 %v4161_v47, %v3671_v35 }
 0x8aa   :  { %v1943_v10 = vpop.f32.mrf.mxu1  ;;  %v1905_v48 = vmul.f32 %v4163_v27, %v3679_v46 }
 0x8ab   :  { %2164 = vst [vmem:[%s4305_s11 + $0x10] sm:$0xff] %v2027_v53  ;;  %v2025_v16 = vmax.f32 %v2009_v61, 0.0  ;;  %v2012_v12 = vadd.f32 %v4198_v37, %v1952_v19  ;;  %v1944_v8 = vadd.f32 %v1943_v10, %v1891_v22  ;;  %v1903_v53 = vmul.f32 %v4167_v52, %v3688_v60 }
 0x8ac   :  { %v2687_v32 = vpop.f32.mrf.mxu1 }
 0x8ad   :  { %2162 = vst [vmem:[%s4305_s11] sm:$0xff] %v2025_v16  ;;  %v2028_v30 = vmax.f32 %v2012_v12, 0.0  ;;  %v2010_v15 = vadd.f32 %v4198_v37, %v1944_v8  ;;  %v1965_v5 = vadd.f32 %v2687_v32, %v1896_v25 }
 0x8ae   :  { %v1956_v11 = vpop.f32.mrf.mxu1 }
 0x8af   :  { %2165 = vst [vmem:[%s4305_s11 + $0x18] sm:$0xff] %v2028_v30  ;;  %v2026_v56 = vmax.f32 %v2010_v15, 0.0  ;;  %v2015_v57 = vadd.f32 %v4198_v37, %v1965_v5  ;;  %v1957_v44 = vadd.f32 %v1956_v11, %v1894_v49 }
 0x8b0   :  { %v2688_v21 = vpop.f32.mrf.mxu1 }
 0x8b1   :  { %2163 = vst [vmem:[%s4305_s11 + $0x8] sm:$0xff] %v2026_v56  ;;  %v2031_v28 = vmax.f32 %v2015_v57, 0.0  ;;  %v2013_v17 = vadd.f32 %v4198_v37, %v1957_v44  ;;  %v1968_v40 = vadd.f32 %v2688_v21, %v1897_v3 }
 0x8b2   :  { %v1959_v20 = vpop.f32.mrf.mxu1 }
 0x8b3   :  { %2168 = vst [vmem:[%s4305_s11 + $0x30] sm:$0xff] %v2031_v28  ;;  %v2029_v26 = vmax.f32 %v2013_v17, 0.0  ;;  %v2016_v29 = vadd.f32 %v4198_v37, %v1968_v40  ;;  %v1960_v33 = vadd.f32 %v1959_v20, %v1895_v59 }
 0x8b4   :  { %v2691_v51 = vpop.f32.mrf.mxu1 }
 0x8b5   :  { %2166 = vst [vmem:[%s4305_s11 + $0x20] sm:$0xff] %v2029_v26  ;;  %v2032_v63 = vmax.f32 %v2016_v29, 0.0  ;;  %v2014_v0 = vadd.f32 %v4198_v37, %v1960_v33  ;;  %v1981_v14 = vadd.f32 %v2691_v51, %v1900_v58 }
 0x8b6   :  { %v1972_v1 = vpop.f32.mrf.mxu1 }
 0x8b7   :  { %2169 = vst [vmem:[%s4305_s11 + $0x38] sm:$0xff] %v2032_v63  ;;  %v2030_v41 = vmax.f32 %v2014_v0, 0.0  ;;  %v2019_v43 = vadd.f32 %v4198_v37, %v1981_v14  ;;  %v1973_v55 = vadd.f32 %v1972_v1, %v1898_v18 }
 0x8b8   :  { %v2692_v39 = vpop.f32.mrf.mxu1 }
 0x8b9   :  { %2167 = vst [vmem:[%s4305_s11 + $0x28] sm:$0xff] %v2030_v41  ;;  %v2035_v13 = vmax.f32 %v2019_v43, 0.0  ;;  %v2017_v7 = vadd.f32 %v4198_v37, %v1973_v55  ;;  %v1984_v36 = vadd.f32 %v2692_v39, %v1901_v62 }
 0x8ba   :  { %v1975_v23 = vpop.f32.mrf.mxu1 }
 0x8bb   :  { %2172 = vst [vmem:[%s4305_s11 + $0x50] sm:$0xff] %v2035_v13  ;;  %v2033_v6 = vmax.f32 %v2017_v7, 0.0  ;;  %v2020_v45 = vadd.f32 %v4198_v37, %v1984_v36  ;;  %v1976_v54 = vadd.f32 %v1975_v23, %v1899_v50 }
 0x8bc   :  { %v2695_v24 = vpop.f32.mrf.mxu1 }
 0x8bd   :  { %2170 = vst [vmem:[%s4305_s11 + $0x40] sm:$0xff] %v2033_v6  ;;  %v2036_v2 = vmax.f32 %v2020_v45, 0.0  ;;  %v2018_v42 = vadd.f32 %v4198_v37, %v1976_v54  ;;  %v1997_v38 = vadd.f32 %v2695_v24, %v1904_v9 }
 0x8be   :  { %v1988_v4 = vpop.f32.mrf.mxu1 }
 0x8bf   :  { %2173 = vst [vmem:[%s4305_s11 + $0x58] sm:$0xff] %v2036_v2  ;;  %v2034_v31 = vmax.f32 %v2018_v42, 0.0  ;;  %v2023_v22 = vadd.f32 %v4198_v37, %v1997_v38  ;;  %v1989_v35 = vadd.f32 %v1988_v4, %v1902_v34 }
 0x8c0   :  { %v2696_v47 = vpop.f32.mrf.mxu1 }
 0x8c1   :  { %2171 = vst [vmem:[%s4305_s11 + $0x48] sm:$0xff] %v2034_v31  ;;  %v2039_v61 = vmax.f32 %v2023_v22, 0.0  ;;  %v2021_v19 = vadd.f32 %v4198_v37, %v1989_v35  ;;  %v2000_v46 = vadd.f32 %v2696_v47, %v1905_v48 }
 0x8c2   :  { %v1991_v27 = vpop.f32.mrf.mxu1 }
 0x8c3   :  { %2176 = vst [vmem:[%s4305_s11 + $0x70] sm:$0xff] %v2039_v61  ;;  %v2037_v10 = vmax.f32 %v2021_v19, 0.0  ;;  %v2024_v25 = vadd.f32 %v4198_v37, %v2000_v46  ;;  %v1992_v16 = vadd.f32 %v1991_v27, %v1903_v53 }
 0x8c5   :  { %2174 = vst [vmem:[%s4305_s11 + $0x60] sm:$0xff] %v2037_v10  ;;  %v2040_v60 = vmax.f32 %v2024_v25, 0.0  ;;  %v2022_v52 = vadd.f32 %v4198_v37, %v1992_v16 }
 0x8c7   :  { %2177 = vst [vmem:[%s4305_s11 + $0x78] sm:$0xff] %v2040_v60  ;;  %v2038_v12 = vmax.f32 %v2022_v52, 0.0 }
 0x8c9   :  { %2175 = vst [vmem:[%s4305_s11 + $0x68] sm:$0xff] %v2038_v12 }
 0x8ca   :  { %2835 = dma.done.wait [#allocation3], 2048  }
 0x8cb   :  { %2836 = vsyncadd [#allocation3], 4294965248 }
 0x8cc   :  { %2197 = vsyncpa [#allocation3], 1 }

</bundles_post_ra>
